<compile_context>
chip_gen: v5e
topology: v5e:2x2
jax: 0.10.0
libtpu: 0.0.40
codegen_flags: <defaults>
</compile_context>

<pallas_src>
import functools

import jax
import jax.numpy as jnp
from jax.experimental import pallas as pl
from jax.experimental.pallas import tpu as pltpu

IN_FEATS = 9          # 3 scores from each of titles / bodies / combined
HIDDEN = 100
HPAD = 128            # hidden dim padded to one full sublane-group width
OUT_FEATS = 3
BN_EPS = 1e-5
LEAKY_SLOPE = 0.2


def _round_up(n, m):
    return ((n + m - 1) // m) * m


@functools.lru_cache(maxsize=None)
def _tpu_defaults():
    """Generation-aware (block_cols, vmem_limit_bytes)."""
    vmem_cap = 128 * 1024 * 1024
    try:
        vmem_cap = int(pltpu.get_tpu_info().vmem_capacity_bytes)
    except Exception:
        pass
    if vmem_cap <= 64 * 1024 * 1024:          # v7x-class: 64 MiB per TC
        return 2048, 32 * 1024 * 1024
    return 8192, 64 * 1024 * 1024             # v5e / v6e: 128 MiB physical


def _leaky(h):
    return jnp.where(h > 0, h, LEAKY_SLOPE * h)


# ---------------------------------------------------------------------------
# Pass 1 (train only): per-feature sum / sum-of-squares over the whole batch.
# Layout is [feature, batch]; the grid axis is a reduction ("arbitrary") and
# the (HPAD, 1) outputs are resident accumulators.
# ---------------------------------------------------------------------------
def _bn_stats_kernel(x_ref, w1_ref, b1_ref, sum_ref, sq_ref, *, batch, tm):
    i = pl.program_id(0)
    last = pl.num_programs(0) - 1

    @pl.when(i == 0)
    def _():
        sum_ref[...] = jnp.zeros_like(sum_ref)
        sq_ref[...] = jnp.zeros_like(sq_ref)

    # One K=9 MXU dot: (HPAD, 9) @ (9, tm) -> (HPAD, tm), then LeakyReLU.
    h = _leaky(jnp.dot(w1_ref[...], x_ref[...],
                       preferred_element_type=jnp.float32) + b1_ref[...])

    def accum(hv):
        sum_ref[...] += jnp.sum(hv, axis=1, keepdims=True)       # running sum
        sq_ref[...] += jnp.sum(hv * hv, axis=1, keepdims=True)   # running sumsq

    if batch % tm == 0:
        accum(h)                                     # no ragged tail: no mask
    else:
        @pl.when(i != last)
        def _():
            accum(h)

        @pl.when(i == last)                          # mask only the last tile
        def _():
            col = i * tm + jax.lax.broadcasted_iota(jnp.int32, (1, tm), 1)
            accum(jnp.where(col < batch, h, 0.0))

    @pl.when(i == last)
    def _():
        inv_b = jnp.float32(1.0 / batch)
        m = sum_ref[...] * inv_b
        v = sq_ref[...] * inv_b - m * m              # biased variance
        sum_ref[...] = m
        sq_ref[...] = jnp.maximum(v, 0.0)            # guard cancellation


# ---------------------------------------------------------------------------
# Head pass (train pass 2 / whole eval pass): projection + LeakyReLU +
# (BN-folded) Linear + sigmoid, all in [feature, batch] layout.
# ---------------------------------------------------------------------------
def _head_kernel(x_ref, w1_ref, b1_ref, w2_ref, b2_ref, o_ref):
    h = _leaky(jnp.dot(w1_ref[...], x_ref[...],
                       preferred_element_type=jnp.float32) + b1_ref[...])
    # BatchNorm already folded into (w2_ref, b2_ref).
    y = jnp.dot(w2_ref[...], h, preferred_element_type=jnp.float32) + b2_ref[...]
    # Numerically-stable sigmoid (exp runs on the EUP slot).
    e = jnp.exp(-jnp.abs(y))
    o_ref[...] = jnp.where(y >= 0, 1.0, e) / (1.0 + e)


# ---------------------------------------------------------------------------
# Wrapper
# ---------------------------------------------------------------------------
def scores_head_forward(titles, bodies, combined, kparams, train=True,
                        block_cols=None, return_batch_stats=False,
                        min_pallas_batch=4096):
    """Fused ScoresHead forward.  titles/bodies/combined: [B, 3] float32."""
    B = titles.shape[0]

    # Small-batch dispatch: fused XLA beats any pallas_call launch here.
    if B < min_pallas_batch:
        return _reference_path(titles, bodies, combined, kparams, train,
                               return_batch_stats)

    default_cols, vmem_limit = _tpu_defaults()
    if block_cols is None:
        block_cols = default_cols
    tm = min(_round_up(block_cols, 128), _round_up(B, 128))
    nb = pl.cdiv(B, tm)

    # Single packed, transposed [feature, batch] operand: lane-dense batch
    # axis, one input DMA per step, one K=9 dot instead of three K=3 dots.
    x_t = jnp.concatenate([titles, bodies, combined], axis=1).T   # [9, B]

    w1t = kparams["w1t"]          # (HPAD, 9)
    b1c = kparams["b1_col"]       # (HPAD, 1)

    x_spec = pl.BlockSpec((IN_FEATS, tm), lambda i: (0, i))
    full = lambda a: pl.BlockSpec(a.shape, lambda i: (0,) * a.ndim)
    col_spec = pl.BlockSpec((HPAD, 1), lambda i: (0, 0))

    batch_stats = None
    if train:
        mean_c, var_c = pl.pallas_call(
            functools.partial(_bn_stats_kernel, batch=B, tm=tm),
            out_shape=(jax.ShapeDtypeStruct((HPAD, 1), jnp.float32),
                       jax.ShapeDtypeStruct((HPAD, 1), jnp.float32)),
            grid=(nb,),
            in_specs=[x_spec, full(w1t), full(b1c)],
            out_specs=(col_spec, col_spec),
            compiler_params=pltpu.CompilerParams(
                dimension_semantics=("arbitrary",),
                vmem_limit_bytes=vmem_limit),
        )(x_t, w1t, b1c)
        batch_stats = (mean_c, var_c)
        # Fold BatchNorm affine into layer 2 (tiny (128,3)-sized XLA ops).
        scale = kparams["gamma_col"] * jax.lax.rsqrt(var_c + BN_EPS)  # (HPAD,1)
        w2_t = kparams["w2t"] * scale.reshape(1, HPAD)                # (3,HPAD)
        b2_c = (kparams["w2t"] @ (kparams["beta_col"] - mean_c * scale)
                + kparams["b2_col"])                                  # (3,1)
    else:
        # Running stats + affine pre-folded once at prepare_params time.
        w2_t, b2_c = kparams["w2t_eval"], kparams["b2_col_eval"]

    out_t = pl.pallas_call(
        _head_kernel,
        out_shape=jax.ShapeDtypeStruct((OUT_FEATS, B), jnp.float32),
        grid=(nb,),
        in_specs=[x_spec, full(w1t), full(b1c), full(w2_t), full(b2_c)],
        out_specs=pl.BlockSpec((OUT_FEATS, tm), lambda i: (0, i)),
        compiler_params=pltpu.CompilerParams(
            dimension_semantics=("parallel",),
            vmem_limit_bytes=vmem_limit),
    )(x_t, w1t, b1c, w2_t, b2_c)

    out = out_t.T     # [B, 3], matches the PyTorch module's output layout

    if train and return_batch_stats:
        return out, (batch_stats[0][:HIDDEN, 0], batch_stats[1][:HIDDEN, 0])
    return out


def _reference_path(titles, bodies, combined, kparams, train,
                    return_batch_stats):
    """Fused XLA path used for small batches (same semantics)."""
    w1, b1, gamma, beta, rmean, rvar, w2, b2 = kparams["raw"]
    x = jnp.concatenate([titles, bodies, combined], axis=1)
    h = _leaky(x @ w1 + b1)
    if train:
        mean = jnp.mean(h, axis=0)
        var = jnp.mean(jnp.square(h - mean), axis=0)     # biased
    else:
        mean, var = rmean, rvar
    hn = (h - mean) * jax.lax.rsqrt(var + BN_EPS) * gamma + beta
    out = jax.nn.sigmoid(hn @ w2 + b2)
    if train and return_batch_stats:
        return out, (mean, var)
    return out


def update_running_stats(rmean, rvar, batch_mean, batch_var, batch,
                         momentum=0.1):
    """PyTorch BatchNorm1d running-stat update (unbiased var, momentum)."""
    unbiased = batch_var * (batch / max(batch - 1, 1))
    new_mean = (1.0 - momentum) * rmean + momentum * batch_mean
    new_var = (1.0 - momentum) * rvar + momentum * unbiased
    return new_mean, new_var


# ---------------------------------------------------------------------------
# Parameters
# ---------------------------------------------------------------------------
def init_params(key):
    """PyTorch-shaped logical parameters (Linear weights stored [in, out])."""
    k1, k2, k3, k4 = jax.random.split(key, 4)
    lim1 = 1.0 / jnp.sqrt(IN_FEATS)
    lim2 = 1.0 / jnp.sqrt(HIDDEN)
    w1 = jax.random.uniform(k1, (IN_FEATS, HIDDEN), jnp.float32, -lim1, lim1)
    b1 = jax.random.uniform(k2, (HIDDEN,), jnp.float32, -lim1, lim1)
    gamma = jnp.ones((HIDDEN,), jnp.float32)
    beta = jnp.zeros((HIDDEN,), jnp.float32)
    rmean = jnp.zeros((HIDDEN,), jnp.float32)
    rvar = jnp.ones((HIDDEN,), jnp.float32)
    w2 = jax.random.uniform(k3, (HIDDEN, OUT_FEATS), jnp.float32, -lim2, lim2)
    b2 = jax.random.uniform(k4, (OUT_FEATS,), jnp.float32, -lim2, lim2)
    return (w1, b1, gamma, beta, rmean, rvar, w2, b2)


def prepare_params(params):
    """One-time conversion to the padded, transposed layout the kernels use."""
    w1, b1, gamma, beta, rmean, rvar, w2, b2 = params

    def pad_col(v, fill=0.0):
        return jnp.full((HPAD, 1), fill, jnp.float32).at[:HIDDEN, 0].set(v)

    w1t = jnp.zeros((HPAD, IN_FEATS), jnp.float32).at[:HIDDEN, :].set(w1.T)
    b1_col = pad_col(b1)
    gamma_col = pad_col(gamma)            # padded rows 0 -> folded scale is 0
    beta_col = pad_col(beta)
    w2t = jnp.zeros((OUT_FEATS, HPAD), jnp.float32).at[:, :HIDDEN].set(w2.T)
    b2_col = b2.reshape(OUT_FEATS, 1)

    # Eval mode: fold running stats + gamma/beta into (w2, b2) once.
    scale_e = gamma * jax.lax.rsqrt(rvar + BN_EPS)                 # (HIDDEN,)
    w2t_eval = jnp.zeros((OUT_FEATS, HPAD), jnp.float32).at[:, :HIDDEN].set(
        (w2 * scale_e[:, None]).T)
    b2_col_eval = (w2.T @ (beta - rmean * scale_e) + b2).reshape(OUT_FEATS, 1)

    return dict(raw=params, w1t=w1t, b1_col=b1_col, gamma_col=gamma_col,
                beta_col=beta_col, w2t=w2t, b2_col=b2_col,
                w2t_eval=w2t_eval, b2_col_eval=b2_col_eval)


# ---------------------------------------------------------------------------
# Pure-JAX reference (PyTorch semantics) for correctness checking.
# ---------------------------------------------------------------------------
def reference_forward(titles, bodies, combined, params, train=True):
    w1, b1, gamma, beta, rmean, rvar, w2, b2 = params
    x = jnp.concatenate([titles, bodies, combined], axis=1)
    h = _leaky(x @ w1 + b1)
    if train:
        mean = jnp.mean(h, axis=0)
        var = jnp.mean((h - mean) ** 2, axis=0)          # biased
    else:
        mean, var = rmean, rvar
    hn = (h - mean) / jnp.sqrt(var + BN_EPS) * gamma + beta
    return jax.nn.sigmoid(hn @ w2 + b2)


if __name__ == "__main__":
    key = jax.random.PRNGKey(0)
    kp, kt, kb, kc = jax.random.split(key, 4)

    params = init_params(kp)
    kparams = prepare_params(params)

    B = 200  # small; with block_cols=128 this exercises 2 tiles + ragged tail
    titles = jax.random.uniform(kt, (B, 3), jnp.float32)
    bodies = jax.random.uniform(kb, (B, 3), jnp.float32)
    combined = jax.random.uniform(kc, (B, 3), jnp.float32)

    # Training path through the Pallas kernels (force past the small-batch
    # dispatch), small block to exercise multi-tile + ragged-tail masking.
    out_tr, (bm, bv) = scores_head_forward(
        titles, bodies, combined, kparams, train=True, block_cols=128,
        return_batch_stats=True, min_pallas_batch=0)
    out_tr = jax.block_until_ready(out_tr)
    ref_tr = reference_forward(titles, bodies, combined, params, train=True)
    assert out_tr.shape == (B, OUT_FEATS)
    assert jnp.allclose(out_tr, ref_tr, atol=1e-4, rtol=1e-4), (
        float(jnp.max(jnp.abs(out_tr - ref_tr))))

    # Batch-statistic accuracy (feeds the running-stat update helper).
    x = jnp.concatenate([titles, bodies, combined], axis=1)
    h = _leaky(x @ params[0] + params[1])
    ref_m = jnp.mean(h, axis=0)
    ref_v = jnp.mean((h - ref_m) ** 2, axis=0)
    assert jnp.allclose(bm, ref_m, atol=2e-5, rtol=1e-4)
    assert jnp.allclose(bv, ref_v, atol=5e-5, rtol=1e-4)

    # PyTorch-style running-stat update (momentum 0.1, unbiased variance).
    new_rm, new_rv = update_running_stats(params[4], params[5], bm, bv, B)
    jax.block_until_ready(new_rm)

    # Eval path through the Pallas kernel (running stats pre-folded into W2).
    out_ev = jax.block_until_ready(
        scores_head_forward(titles, bodies, combined, kparams, train=False,
                            block_cols=128, min_pallas_batch=0))
    ref_ev = reference_forward(titles, bodies, combined, params, train=False)
    assert jnp.allclose(out_ev, ref_ev, atol=1e-4, rtol=1e-4)

    # Default (generation-aware) block size — single tile covering the batch.
    out_d = jax.block_until_ready(
        scores_head_forward(titles, bodies, combined, kparams, train=True,
                            min_pallas_batch=0))
    assert jnp.allclose(out_d, ref_tr, atol=1e-4, rtol=1e-4)

    # Small-batch dispatch path (fused XLA, B < min_pallas_batch default).
    out_sb = jax.block_until_ready(
        scores_head_forward(titles, bodies, combined, kparams, train=True))
    assert jnp.allclose(out_sb, ref_tr, atol=1e-5, rtol=1e-5)

    print("KERNEL_OK")
</pallas_src>

<mosaic_0001>
module attributes {stable_mosaic.version = 11 : i64} {
  func.func @_bn_stats_kernel(%arg0: i32, %arg1: memref<9x128xf32, #tpu.memory_space<vmem>>, %arg2: memref<128x9xf32, #tpu.memory_space<vmem>>, %arg3: memref<128x1xf32, #tpu.memory_space<vmem>>, %arg4: memref<128x1xf32, #tpu.memory_space<vmem>>, %arg5: memref<128x1xf32, #tpu.memory_space<vmem>>) attributes {dimension_semantics = [#tpu.dimension_semantics<arbitrary>], iteration_bounds = array<i64: 2>, scalar_prefetch = 0 : i64, scratch_operands = 0 : i64, tpu.core_type = #tpu.core_type<tc>, window_params = [{transform_indices = @transform_0, window_bounds = array<i64: 9, 128>}, {pipeline_mode = #tpu.pipeline_mode<synchronous>, transform_indices = @transform_1, window_bounds = array<i64: 128, 9>}, {pipeline_mode = #tpu.pipeline_mode<synchronous>, transform_indices = @transform_2, window_bounds = array<i64: 128, 1>}, {pipeline_mode = #tpu.pipeline_mode<synchronous>, transform_indices = @transform_3, window_bounds = array<i64: 128, 1>}, {pipeline_mode = #tpu.pipeline_mode<synchronous>, transform_indices = @transform_4, window_bounds = array<i64: 128, 1>}]} {
    %c0_i32 = arith.constant 0 : i32
    %0 = arith.cmpi eq, %arg0, %c0_i32 : i32
    %1 = arith.extui %0 : i1 to i32
    %c0_i32_0 = arith.constant 0 : i32
    %2 = arith.cmpi ne, %1, %c0_i32_0 : i32
    scf.if %2 {
      %cst_13 = arith.constant 0.000000e+00 : f32
      %23 = vector.broadcast %cst_13 : f32 to vector<128x1xf32>
      %c0_14 = arith.constant 0 : index
      %c0_15 = arith.constant 0 : index
      %24 = vector.load %arg4[%c0_14, %c0_15] : memref<128x1xf32, #tpu.memory_space<vmem>>, vector<128x1xf32>
      tpu.vector_store %arg4[%c0_14, %c0_15], %23 {strides = array<i32>} : memref<128x1xf32, #tpu.memory_space<vmem>>, vector<128x1xf32>,
      %cst_16 = arith.constant 0.000000e+00 : f32
      %25 = vector.broadcast %cst_16 : f32 to vector<128x1xf32>
      %c0_17 = arith.constant 0 : index
      %c0_18 = arith.constant 0 : index
      %26 = vector.load %arg5[%c0_17, %c0_18] : memref<128x1xf32, #tpu.memory_space<vmem>>, vector<128x1xf32>
      tpu.vector_store %arg5[%c0_17, %c0_18], %25 {strides = array<i32>} : memref<128x1xf32, #tpu.memory_space<vmem>>, vector<128x1xf32>,
    } else {
    }
    %c0 = arith.constant 0 : index
    %c0_1 = arith.constant 0 : index
    %3 = vector.load %arg2[%c0, %c0_1] : memref<128x9xf32, #tpu.memory_space<vmem>>, vector<128x9xf32>
    %c0_2 = arith.constant 0 : index
    %c0_3 = arith.constant 0 : index
    %4 = vector.load %arg1[%c0_2, %c0_3] : memref<9x128xf32, #tpu.memory_space<vmem>>, vector<9x128xf32>
    %cst = arith.constant dense<0.000000e+00> : vector<128x128xf32>
    %5 = tpu.matmul %3, %4, %cst {dimension_numbers = #tpu.dot_dimension_numbers<[1], [0], [0], [1], [0, 0, 1, 1], [], []>} : vector<128x9xf32>, vector<9x128xf32>, vector<128x128xf32> -> vector<128x128xf32>
    %c0_4 = arith.constant 0 : index
    %c0_5 = arith.constant 0 : index
    %6 = vector.load %arg3[%c0_4, %c0_5] : memref<128x1xf32, #tpu.memory_space<vmem>>, vector<128x1xf32>
    %7 = vector.broadcast %6 : vector<128x1xf32> to vector<128x128xf32>
    %8 = arith.addf %5, %7 : vector<128x128xf32>
    %cst_6 = arith.constant 0.000000e+00 : f32
    %9 = vector.broadcast %cst_6 : f32 to vector<128x128xf32>
    %10 = arith.cmpf ogt, %8, %9 : vector<128x128xf32>
    %cst_7 = arith.constant 2.000000e-01 : f32
    %11 = vector.broadcast %cst_7 : f32 to vector<128x128xf32>
    %12 = arith.mulf %11, %8 : vector<128x128xf32>
    %13 = arith.select %10, %8, %12 : vector<128x128xi1>, vector<128x128xf32>
    %c1_i32 = arith.constant 1 : i32
    %14 = arith.cmpi ne, %arg0, %c1_i32 : i32
    %15 = arith.extui %14 : i1 to i32
    %c0_i32_8 = arith.constant 0 : i32
    %16 = arith.cmpi ne, %15, %c0_i32_8 : i32
    scf.if %16 {
      %c0_13 = arith.constant 0 : index
      %c0_14 = arith.constant 0 : index
      %23 = vector.load %arg4[%c0_13, %c0_14] : memref<128x1xf32, #tpu.memory_space<vmem>>, vector<128x1xf32>
      %cst_15 = arith.constant dense<0.000000e+00> : vector<128xf32>
      %24 = vector.multi_reduction <add>, %13, %cst_15 [1] : vector<128x128xf32> to vector<128xf32>
      %25 = vector.shape_cast %24 : vector<128xf32> to vector<128x1xf32>
      %26 = arith.addf %23, %25 : vector<128x1xf32>
      %c0_16 = arith.constant 0 : index
      %c0_17 = arith.constant 0 : index
      %27 = vector.load %arg4[%c0_16, %c0_17] : memref<128x1xf32, #tpu.memory_space<vmem>>, vector<128x1xf32>
      tpu.vector_store %arg4[%c0_16, %c0_17], %26 {strides = array<i32>} : memref<128x1xf32, #tpu.memory_space<vmem>>, vector<128x1xf32>,
      %c0_18 = arith.constant 0 : index
      %c0_19 = arith.constant 0 : index
      %28 = vector.load %arg5[%c0_18, %c0_19] : memref<128x1xf32, #tpu.memory_space<vmem>>, vector<128x1xf32>
      %29 = arith.mulf %13, %13 : vector<128x128xf32>
      %cst_20 = arith.constant dense<0.000000e+00> : vector<128xf32>
      %30 = vector.multi_reduction <add>, %29, %cst_20 [1] : vector<128x128xf32> to vector<128xf32>
      %31 = vector.shape_cast %30 : vector<128xf32> to vector<128x1xf32>
      %32 = arith.addf %28, %31 : vector<128x1xf32>
      %c0_21 = arith.constant 0 : index
      %c0_22 = arith.constant 0 : index
      %33 = vector.load %arg5[%c0_21, %c0_22] : memref<128x1xf32, #tpu.memory_space<vmem>>, vector<128x1xf32>
      tpu.vector_store %arg5[%c0_21, %c0_22], %32 {strides = array<i32>} : memref<128x1xf32, #tpu.memory_space<vmem>>, vector<128x1xf32>,
    } else {
    }
    %c1_i32_9 = arith.constant 1 : i32
    %17 = arith.cmpi eq, %arg0, %c1_i32_9 : i32
    %18 = arith.extui %17 : i1 to i32
    %c0_i32_10 = arith.constant 0 : i32
    %19 = arith.cmpi ne, %18, %c0_i32_10 : i32
    scf.if %19 {
      %c128_i32 = arith.constant 128 : i32
      %23 = arith.muli %arg0, %c128_i32 : i32
      %24 = tpu.iota {dimensions = array<i32: 1>} : vector<1x128xi32>
      %25 = vector.broadcast %23 : i32 to vector<1x128xi32>
      %26 = arith.addi %25, %24 : vector<1x128xi32>
      %c200_i32 = arith.constant 200 : i32
      %27 = vector.broadcast %c200_i32 : i32 to vector<1x128xi32>
      %28 = arith.cmpi slt, %26, %27 : vector<1x128xi32>
      %cst_13 = arith.constant 0.000000e+00 : f32
      %29 = vector.shape_cast %28 : vector<1x128xi1> to vector<1x128xi1>
      %30 = vector.broadcast %29 : vector<1x128xi1> to vector<128x128xi1>
      %31 = vector.broadcast %cst_13 : f32 to vector<128x128xf32>
      %32 = arith.select %30, %13, %31 : vector<128x128xi1>, vector<128x128xf32>
      %c0_14 = arith.constant 0 : index
      %c0_15 = arith.constant 0 : index
      %33 = vector.load %arg4[%c0_14, %c0_15] : memref<128x1xf32, #tpu.memory_space<vmem>>, vector<128x1xf32>
      %cst_16 = arith.constant dense<0.000000e+00> : vector<128xf32>
      %34 = vector.multi_reduction <add>, %32, %cst_16 [1] : vector<128x128xf32> to vector<128xf32>
      %35 = vector.shape_cast %34 : vector<128xf32> to vector<128x1xf32>
      %36 = arith.addf %33, %35 : vector<128x1xf32>
      %c0_17 = arith.constant 0 : index
      %c0_18 = arith.constant 0 : index
      %37 = vector.load %arg4[%c0_17, %c0_18] : memref<128x1xf32, #tpu.memory_space<vmem>>, vector<128x1xf32>
      tpu.vector_store %arg4[%c0_17, %c0_18], %36 {strides = array<i32>} : memref<128x1xf32, #tpu.memory_space<vmem>>, vector<128x1xf32>,
      %c0_19 = arith.constant 0 : index
      %c0_20 = arith.constant 0 : index
      %38 = vector.load %arg5[%c0_19, %c0_20] : memref<128x1xf32, #tpu.memory_space<vmem>>, vector<128x1xf32>
      %39 = arith.mulf %32, %32 : vector<128x128xf32>
      %cst_21 = arith.constant dense<0.000000e+00> : vector<128xf32>
      %40 = vector.multi_reduction <add>, %39, %cst_21 [1] : vector<128x128xf32> to vector<128xf32>
      %41 = vector.shape_cast %40 : vector<128xf32> to vector<128x1xf32>
      %42 = arith.addf %38, %41 : vector<128x1xf32>
      %c0_22 = arith.constant 0 : index
      %c0_23 = arith.constant 0 : index
      %43 = vector.load %arg5[%c0_22, %c0_23] : memref<128x1xf32, #tpu.memory_space<vmem>>, vector<128x1xf32>
      tpu.vector_store %arg5[%c0_22, %c0_23], %42 {strides = array<i32>} : memref<128x1xf32, #tpu.memory_space<vmem>>, vector<128x1xf32>,
    } else {
    }
    %c1_i32_11 = arith.constant 1 : i32
    %20 = arith.cmpi eq, %arg0, %c1_i32_11 : i32
    %21 = arith.extui %20 : i1 to i32
    %c0_i32_12 = arith.constant 0 : i32
    %22 = arith.cmpi ne, %21, %c0_i32_12 : i32
    scf.if %22 {
      %c0_13 = arith.constant 0 : index
      %c0_14 = arith.constant 0 : index
      %23 = vector.load %arg4[%c0_13, %c0_14] : memref<128x1xf32, #tpu.memory_space<vmem>>, vector<128x1xf32>
      %cst_15 = arith.constant 5.000000e-03 : f32
      %24 = vector.broadcast %cst_15 : f32 to vector<128x1xf32>
      %25 = arith.mulf %23, %24 : vector<128x1xf32>
      %c0_16 = arith.constant 0 : index
      %c0_17 = arith.constant 0 : index
      %26 = vector.load %arg5[%c0_16, %c0_17] : memref<128x1xf32, #tpu.memory_space<vmem>>, vector<128x1xf32>
      %cst_18 = arith.constant 5.000000e-03 : f32
      %27 = vector.broadcast %cst_18 : f32 to vector<128x1xf32>
      %28 = arith.mulf %26, %27 : vector<128x1xf32>
      %29 = arith.mulf %25, %25 : vector<128x1xf32>
      %30 = arith.subf %28, %29 : vector<128x1xf32>
      %c0_19 = arith.constant 0 : index
      %c0_20 = arith.constant 0 : index
      %31 = vector.load %arg4[%c0_19, %c0_20] : memref<128x1xf32, #tpu.memory_space<vmem>>, vector<128x1xf32>
      tpu.vector_store %arg4[%c0_19, %c0_20], %25 {strides = array<i32>} : memref<128x1xf32, #tpu.memory_space<vmem>>, vector<128x1xf32>,
      %cst_21 = arith.constant 0.000000e+00 : f32
      %32 = vector.broadcast %cst_21 : f32 to vector<128x1xf32>
      %33 = arith.maximumf %30, %32 : vector<128x1xf32>
      %c0_22 = arith.constant 0 : index
      %c0_23 = arith.constant 0 : index
      %34 = vector.load %arg5[%c0_22, %c0_23] : memref<128x1xf32, #tpu.memory_space<vmem>>, vector<128x1xf32>
      tpu.vector_store %arg5[%c0_22, %c0_23], %33 {strides = array<i32>} : memref<128x1xf32, #tpu.memory_space<vmem>>, vector<128x1xf32>,
    } else {
    }
    return
  }
  func.func @transform_0(%arg0: i32) -> (i32, i32) {
    %c0_i32 = arith.constant 0 : i32
    %c0_i32_0 = arith.constant 0 : i32
    return %c0_i32, %arg0 : i32, i32
  }
  func.func @transform_1(%arg0: i32) -> (i32, i32) {
    %c0_i32 = arith.constant 0 : i32
    %c0_i32_0 = arith.constant 0 : i32
    %c0_i32_1 = arith.constant 0 : i32
    return %c0_i32, %c0_i32_0 : i32, i32
  }
  func.func @transform_2(%arg0: i32) -> (i32, i32) {
    %c0_i32 = arith.constant 0 : i32
    %c0_i32_0 = arith.constant 0 : i32
    %c0_i32_1 = arith.constant 0 : i32
    return %c0_i32, %c0_i32_0 : i32, i32
  }
  func.func @transform_3(%arg0: i32) -> (i32, i32) {
    %c0_i32 = arith.constant 0 : i32
    %c0_i32_0 = arith.constant 0 : i32
    %c0_i32_1 = arith.constant 0 : i32
    return %c0_i32, %c0_i32_0 : i32, i32
  }
  func.func @transform_4(%arg0: i32) -> (i32, i32) {
    %c0_i32 = arith.constant 0 : i32
    %c0_i32_0 = arith.constant 0 : i32
    %c0_i32_1 = arith.constant 0 : i32
    return %c0_i32, %c0_i32_0 : i32, i32
  }
}

</mosaic_0001>

<bundles_post_ra>
// kernel: tpu_custom_call.1
= control target key start
LH: loop header
LB: loop body
LE: loop exit
PB: predicated region body
PF: predicated region fallthrough
CT: control target
= control target key end

     0   :  { %s1223_s15 = smov 0   ;;  %s1225_s16 = smov 0   ;;  %s2383_s0 = inlined_call_operand.vmem [shape: f32[9,200], index: 0, kind: input, shape index: {}]   ;;  %s2384_s1 = inlined_call_operand.vmem [shape: f32[128,9], index: 1, kind: input, shape index: {}]   ;;  %s2385_s2 = inlined_call_operand.vmem [shape: f32[128,1], index: 2, kind: input, shape index: {}]   ;;  %s2386_s3 = inlined_call_operand.vmem [shape: f32[128,1], index: 3, kind: output, shape index: {0}]   ;;  %s2387_s4 = inlined_call_operand.vmem [shape: f32[128,1], index: 4, kind: output, shape index: {1}]  }
   0x1   :  { %s1227_s17 = smov 0  }
   0x2 LB: > { %s1236_s18 = sadd.s32 4294967295, %s1194_s17   ;;  %s1238_s19 = sadd.s32 1, %s1194_s17   ;;  %s1194_s17 = sphi %s1227_s17, %s2390_s17   ;;  %s1190_s16 = sphi %s1225_s16, %s2389_s16   ;;  %s1186_s15 = sphi %s1223_s15, %s2388_s15  }
   0x3   : > { %s19_s20 = ssub.s32 %s1194_s17, %s1238_s19  ;;  %s22_s21 = sadd.s32 1, %s1190_s16 }
   0x4   : > { %p20_p0 = scmp.eq.s32.totalorder %s19_s20, 0  ;;  %p29_p1 = scmp.ne.s32.totalorder %s1190_s16, %s1186_s15 }
   0x5   : > { %p30_p2 = scmp.eq.s32.totalorder %s1194_s17, 0  ;;  %p1109_p4 = scmp.ge.s32.totalorder %s1194_s17, 2 }
   0x6   : > { %s1245_s22 = scalar_select %p20_p0, %s1190_s16, %s22_s21  }
   0x7   : > { %p31_p3 = por %p30_p2, %p29_p1  ;;  %145 = sbr.rel (%p1109_p4) target bundleno = 18 (0x12), region = 24 }
   0xc   : > { %148 = sbr.rel (!%p31_p3) target bundleno = 18 (0x12), region = 28  ;;  %s150_s23 = sand.u32 (%p31_p3), 1, %s1190_s16  }
   0xd   : > { %s1111_s24 = sshll.u32 (%p31_p3), %s1194_s17, 3  ;;  %s1110_s25 = sshll.u32 (%p31_p3), %s150_s23, 4 }
   0xe   : > { %s154_s28 = scalar_lea.vmem (%p31_p3), %s2383_s0, %s1111_s24  ;;  %s152_s29 = scalar_lea.vmem (%p31_p3), [#allocation2], %s1110_s25 }
   0xf   : > { %v185_v0 = vld [vmem:[%s154_s28] sm:$0xff] (%p31_p3)  ;;  %v187_v1 = vld [vmem:[%s154_s28 + $0x10] sm:$0xff] (%p31_p3) }
  0x10   : > { %186 = vst [vmem:[%s152_s29] sm:$0xff] (%p31_p3), %v185_v0 }
  0x11   : > { %188 = vst [vmem:[%s152_s29 + $0x8] sm:$0xff] %v187_v1 }
  0x12 PF: > { %p1112_p5 = scmp.ge.s32.totalorder %s1194_s17, 1  ;;  %p193_p6 = scmp.lt.s32.totalorder %s1194_s17, 3 }
  0x14   : > { %p194_p7 = pnand %p1112_p5, %p193_p6 }
  0x15   : > { %s200_s30 = sand.u32 (!%p194_p7), 1, %s1186_s15   ;;  %p1114_p8 = scmp.ne.s32.totalorder (!%p194_p7), %s1236_s18, 0 }
  0x16   : > { %197 = sbr.rel (%p194_p7) target bundleno = 666 (0x29a), region = 66  ;;  %s1252_s5 = sshll.u32 (!%p194_p7), %s200_s30, 4 }
  0x17   : > { %s202_s6 = scalar_lea.vmem (!%p194_p7), [#allocation2], %s1252_s5 }
  0x1b   : > { %223 = sbr.rel (%p1114_p8) target bundleno = 65 (0x41), region = 74 }
  0x20   : > { %vm224_vm0 = vcmask 7168   ;;  %v1196_v2 = vmov 0.0  }
  0x21   : > { %225 = vst.msk [vmem:[%s2386_s3] sm:$0xff] %vm224_vm0, %v1196_v2 }
  0x22   : > { %226 = vst.msk [vmem:[%s2386_s3 + $0x8] sm:$0xff] %vm224_vm0, %v1196_v2 }
  0x23   : > { %227 = vst.msk [vmem:[%s2386_s3 + $0x10] sm:$0xff] %vm224_vm0, %v1196_v2 }
  0x24   : > { %228 = vst.msk [vmem:[%s2386_s3 + $0x18] sm:$0xff] %vm224_vm0, %v1196_v2 }
  0x25   : > { %229 = vst.msk [vmem:[%s2386_s3 + $0x20] sm:$0xff] %vm224_vm0, %v1196_v2 }
  0x26   : > { %230 = vst.msk [vmem:[%s2386_s3 + $0x28] sm:$0xff] %vm224_vm0, %v1196_v2 }
  0x27   : > { %231 = vst.msk [vmem:[%s2386_s3 + $0x30] sm:$0xff] %vm224_vm0, %v1196_v2 }
  0x28   : > { %232 = vst.msk [vmem:[%s2386_s3 + $0x38] sm:$0xff] %vm224_vm0, %v1196_v2 }
  0x29   : > { %233 = vst.msk [vmem:[%s2386_s3 + $0x40] sm:$0xff] %vm224_vm0, %v1196_v2 }
  0x2a   : > { %234 = vst.msk [vmem:[%s2386_s3 + $0x48] sm:$0xff] %vm224_vm0, %v1196_v2 }
  0x2b   : > { %235 = vst.msk [vmem:[%s2386_s3 + $0x50] sm:$0xff] %vm224_vm0, %v1196_v2 }
  0x2c   : > { %236 = vst.msk [vmem:[%s2386_s3 + $0x58] sm:$0xff] %vm224_vm0, %v1196_v2 }
  0x2d   : > { %237 = vst.msk [vmem:[%s2386_s3 + $0x60] sm:$0xff] %vm224_vm0, %v1196_v2 }
  0x2e   : > { %238 = vst.msk [vmem:[%s2386_s3 + $0x68] sm:$0xff] %vm224_vm0, %v1196_v2 }
  0x2f   : > { %239 = vst.msk [vmem:[%s2386_s3 + $0x70] sm:$0xff] %vm224_vm0, %v1196_v2 }
  0x30   : > { %240 = vst.msk [vmem:[%s2386_s3 + $0x78] sm:$0xff] %vm224_vm0, %v1196_v2 }
  0x31   : > { %241 = vst.msk [vmem:[%s2387_s4] sm:$0xff] %vm224_vm0, %v1196_v2 }
  0x32   : > { %242 = vst.msk [vmem:[%s2387_s4 + $0x8] sm:$0xff] %vm224_vm0, %v1196_v2 }
  0x33   : > { %243 = vst.msk [vmem:[%s2387_s4 + $0x10] sm:$0xff] %vm224_vm0, %v1196_v2 }
  0x34   : > { %244 = vst.msk [vmem:[%s2387_s4 + $0x18] sm:$0xff] %vm224_vm0, %v1196_v2 }
  0x35   : > { %245 = vst.msk [vmem:[%s2387_s4 + $0x20] sm:$0xff] %vm224_vm0, %v1196_v2 }
  0x36   : > { %246 = vst.msk [vmem:[%s2387_s4 + $0x28] sm:$0xff] %vm224_vm0, %v1196_v2 }
  0x37   : > { %247 = vst.msk [vmem:[%s2387_s4 + $0x30] sm:$0xff] %vm224_vm0, %v1196_v2 }
  0x38   : > { %248 = vst.msk [vmem:[%s2387_s4 + $0x38] sm:$0xff] %vm224_vm0, %v1196_v2 }
  0x39   : > { %249 = vst.msk [vmem:[%s2387_s4 + $0x40] sm:$0xff] %vm224_vm0, %v1196_v2 }
  0x3a   : > { %250 = vst.msk [vmem:[%s2387_s4 + $0x48] sm:$0xff] %vm224_vm0, %v1196_v2 }
  0x3b   : > { %251 = vst.msk [vmem:[%s2387_s4 + $0x50] sm:$0xff] %vm224_vm0, %v1196_v2 }
  0x3c   : > { %252 = vst.msk [vmem:[%s2387_s4 + $0x58] sm:$0xff] %vm224_vm0, %v1196_v2 }
  0x3d   : > { %253 = vst.msk [vmem:[%s2387_s4 + $0x60] sm:$0xff] %vm224_vm0, %v1196_v2 }
  0x3e   : > { %254 = vst.msk [vmem:[%s2387_s4 + $0x68] sm:$0xff] %vm224_vm0, %v1196_v2 }
  0x3f   : > { %255 = vst.msk [vmem:[%s2387_s4 + $0x70] sm:$0xff] %vm224_vm0, %v1196_v2 }
  0x40   : > { %256 = vst.msk [vmem:[%s2387_s4 + $0x78] sm:$0xff] %vm224_vm0, %v1196_v2 }
  0x41 PF: > { %v274_v3 = vld [vmem:[%s202_s6 + $0x8] sm:$0x1]  ;;  %vm420_vm1 = vcmask 1040384   ;;  %v1197_v4 = vmov 0   ;;  %v277_v5 = vld [vmem:[%s2385_s2 + $0x10] sm:$0xff]  ;;  %v275_v6 = vld [vmem:[%s2385_s2] sm:$0xff] }
  0x42   : > { %1170 = vset.pattern.permute.xlu1 %v1197_v4  ;;  %1169 = vset.pattern.permute.xlu0 %v1197_v4  ;;  %v273_v7 = vld [vmem:[%s202_s6] sm:$0xff]  ;;  %vm371_vm2 = vcmask 72704   ;;  %v278_v13 = vld [vmem:[%s2385_s2 + $0x18] sm:$0xff]  ;;  %v276_v14 = vld [vmem:[%s2385_s2 + $0x8] sm:$0xff]  ;;  %p1132_p9 = scmp.eq.s32.totalorder %s1236_s18, 1 }
  0x43   : > { %1115 = vmatpush.msk.msra.mxu0 %vm420_vm1, %v274_v3  ;;  %1137 = vmatpush.msk.msra.mxu1 %vm420_vm1, %v274_v3  ;;  %v257_v8 = vld [vmem:[%s2384_s1] sm:$0xff]  ;;  %v258_v15 = vld [vmem:[%s2384_s1 + $0x8] sm:$0xff]  ;;  %v282_v20 = vld [vmem:[%s2385_s2 + $0x38] sm:$0xff] }
  0x44   : > { %1138 = vmatpush.msk.msra.mxu2 %vm420_vm1, %v274_v3  ;;  %1139 = vmatpush.msk.msra.mxu3 %vm420_vm1, %v274_v3  ;;  %v261_v9 = vld [vmem:[%s2384_s1 + $0x20] sm:$0xff]  ;;  %v262_v16 = vld [vmem:[%s2384_s1 + $0x28] sm:$0xff]  ;;  %v281_v21 = vld [vmem:[%s2385_s2 + $0x30] sm:$0xff] }
  0x45   : > { %303 = vperm.xlu1 %1170, %v277_v5   ;;  %293 = vperm.xlu0 %1169, %v275_v6   ;;  %v265_v10 = vld [vmem:[%s2384_s1 + $0x40] sm:$0xff]  ;;  %v266_v17 = vld [vmem:[%s2384_s1 + $0x48] sm:$0xff]  ;;  %v259_v22 = vld [vmem:[%s2384_s1 + $0x10] sm:$0xff] }
  0x46   : > { %439 = vmatpush.msra.mxu0 %v273_v7  ;;  %1140 = vmatpush.msra.mxu1 %v273_v7  ;;  %v269_v11 = vld [vmem:[%s2384_s1 + $0x60] sm:$0xff]  ;;  %v270_v18 = vld [vmem:[%s2384_s1 + $0x68] sm:$0xff]  ;;  %v263_v23 = vld [vmem:[%s2384_s1 + $0x30] sm:$0xff] }
  0x47   : > { %1141 = vmatpush.msra.mxu2 %v273_v7  ;;  %1142 = vmatpush.msra.mxu3 %v273_v7  ;;  %v279_v12 = vld [vmem:[%s2385_s2 + $0x20] sm:$0xff]  ;;  %v280_v19 = vld [vmem:[%s2385_s2 + $0x28] sm:$0xff]  ;;  %v267_v24 = vld [vmem:[%s2384_s1 + $0x50] sm:$0xff] }
  0x48   : > { %1171 = vset.pattern.permute.xlu2 %v1197_v4  ;;  %1116 = vmatmul.msk.f32.vlgmr.msra.gmra.mxu0 %vm371_vm2, %v257_v8  ;;  %v271_v25 = vld [vmem:[%s2384_s1 + $0x70] sm:$0xff]  ;;  %v283_v26 = vld [vmem:[%s2385_s2 + $0x40] sm:$0xff]  ;;  %v284_v28 = vld [vmem:[%s2385_s2 + $0x48] sm:$0xff] }
  0x49   : > { %1120 = vmatmul.msk.f32.vlgmr.msra.gmra.mxu1 %vm371_vm2, %v261_v9  ;;  %1124 = vmatmul.msk.f32.vlgmr.msra.gmra.mxu2 %vm371_vm2, %v265_v10  ;;  %v285_v27 = vld [vmem:[%s2385_s2 + $0x50] sm:$0xff]  ;;  %v260_v29 = vld [vmem:[%s2384_s1 + $0x18] sm:$0xff]  ;;  %v288_v34 = vld [vmem:[%s2385_s2 + $0x68] sm:$0xff] }
  0x4a   : > { %1128 = vmatmul.msk.f32.vlgmr.msra.gmra.mxu3 %vm371_vm2, %v269_v11  ;;  %313 = vperm.xlu2 %1171, %v279_v12   ;;  %v264_v30 = vld [vmem:[%s2384_s1 + $0x38] sm:$0xff]  ;;  %v287_v35 = vld [vmem:[%s2385_s2 + $0x60] sm:$0xff]  ;;  %v289_v36 = vld [vmem:[%s2385_s2 + $0x70] sm:$0xff] }
  0x4b   : > { %v268_v31 = vld [vmem:[%s2384_s1 + $0x58] sm:$0xff] }
  0x4c   : > { %v272_v32 = vld [vmem:[%s2384_s1 + $0x78] sm:$0xff] }
  0x4d   : > { %308 = vperm.xlu1 %1170, %v278_v13   ;;  %298 = vperm.xlu0 %1169, %v276_v14   ;;  %v286_v33 = vld [vmem:[%s2385_s2 + $0x58] sm:$0xff] }
  0x4e   : > { %v290_v37 = vld [vmem:[%s2385_s2 + $0x78] sm:$0xff] }
  0x50   : > { %1117 = vmatmul.msk.f32.gmra.mxu0 %vm371_vm2, %v258_v15 }
  0x51   : > { %1121 = vmatmul.msk.f32.gmra.mxu1 %vm371_vm2, %v262_v16  ;;  %1125 = vmatmul.msk.f32.gmra.mxu2 %vm371_vm2, %v266_v17 }
  0x52   : > { %1129 = vmatmul.msk.f32.gmra.mxu3 %vm371_vm2, %v270_v18  ;;  %318 = vperm.xlu2 %1171, %v280_v19  }
  0x55   : > { %328 = vperm.xlu1 %1170, %v282_v20   ;;  %323 = vperm.xlu0 %1169, %v281_v21  }
  0x58   : > { %1118 = vmatmul.msk.f32.gmra.mxu0 %vm371_vm2, %v259_v22 }
  0x59   : > { %1122 = vmatmul.msk.f32.gmra.mxu1 %vm371_vm2, %v263_v23  ;;  %1126 = vmatmul.msk.f32.gmra.mxu2 %vm371_vm2, %v267_v24 }
  0x5a   : > { %1130 = vmatmul.msk.f32.gmra.mxu3 %vm371_vm2, %v271_v25  ;;  %333 = vperm.xlu2 %1171, %v283_v26  }
  0x5d   : > { %343 = vperm.xlu1 %1170, %v285_v27   ;;  %338 = vperm.xlu0 %1169, %v284_v28  }
  0x60   : > { %1119 = vmatmul.msk.f32.gmra.mxu0 %vm371_vm2, %v260_v29 }
  0x61   : > { %1123 = vmatmul.msk.f32.gmra.mxu1 %vm371_vm2, %v264_v30  ;;  %1127 = vmatmul.msk.f32.gmra.mxu2 %vm371_vm2, %v268_v31 }
  0x62   : > { %1131 = vmatmul.msk.f32.gmra.mxu3 %vm371_vm2, %v272_v32  ;;  %348 = vperm.xlu2 %1171, %v286_v33  }
  0x65   : > { %358 = vperm.xlu1 %1170, %v288_v34   ;;  %353 = vperm.xlu0 %1169, %v287_v35  }
  0x6a   : > { %363 = vperm.xlu2 %1171, %v289_v36  }
  0x6d   : > { %368 = vperm.xlu0 %1169, %v290_v37  }
  0xa4   : > { %v314_v38 = vpop.permute.xlu2 %313 }
  0xac   : > { %v319_v41 = vpop.permute.xlu2 %318 }
  0xb4   : > { %v334_v50 = vpop.permute.xlu2 %333 }
  0xb7   : > { %v304_v39 = vpop.permute.xlu1 %303  ;;  %v294_v40 = vpop.permute.xlu0 %293 }
  0xbc   : > { %v349_v4 = vpop.permute.xlu2 %348 }
  0xbf   : > { %v1500_v42 = vpop.permute.xlu1 %308  ;;  %v299_v43 = vpop.permute.xlu0 %298 }
  0xc4   : > { %v364_v26 = vpop.permute.xlu2 %363 }
  0xc5   : > { %v441_v44 = vpop.f32.mrf.mxu0 }
  0xc6   : > { %v442_v45 = vadd.f32 %v441_v44, %v294_v40  ;;  %v453_v46 = vpop.f32.mrf.mxu1 }
  0xc7   : > { %v454_v47 = vadd.f32 %v453_v46, %v314_v38  ;;  %v1502_v48 = vpop.permute.xlu1 %328  ;;  %v324_v49 = vpop.permute.xlu0 %323 }
  0xc8   : > { %vm489_vm3 = vcmp.gt.f32.partialorder %v442_v45, 0.0  ;;  %v505_v51 = vmul.f32 0.2, %v442_v45 }
  0xc9   : > { %vm493_vm4 = vcmp.gt.f32.partialorder %v454_v47, 0.0  ;;  %v509_v52 = vmul.f32 0.2, %v454_v47 }
  0xca   : > { %v1504_v53 = vsel %vm489_vm3, %v442_v45, %v505_v51 }
  0xcb   : > { %v1506_v54 = vsel %vm493_vm4, %v454_v47, %v509_v52 }
  0xcc   : > { %v465_v55 = vpop.f32.mrf.mxu2 }
  0xcd   : > { %v466_v56 = vadd.f32 %v465_v55, %v334_v50  ;;  %v477_v57 = vpop.f32.mrf.mxu3  ;;  %v444_v58 = vpop.f32.mrf.mxu0 }
  0xce   : > { %v445_v59 = vadd.f32 %v444_v58, %v299_v43  ;;  %v456_v60 = vpop.f32.mrf.mxu1 }
  0xcf   : > { %vm497_vm5 = vcmp.gt.f32.partialorder %v466_v56, 0.0  ;;  %v513_v61 = vmul.f32 0.2, %v466_v56  ;;  %v457_v62 = vadd.f32 %v456_v60, %v319_v41  ;;  %v344_v63 = vpop.permute.xlu1 %343  ;;  %v339_v0 = vpop.permute.xlu0 %338 }
  0xd0   : > { %vm490_vm6 = vcmp.gt.f32.partialorder %v445_v59, 0.0  ;;  %v506_v1 = vmul.f32 0.2, %v445_v59 }
  0xd1   : > { %v1508_v2 = vsel %vm497_vm5, %v466_v56, %v513_v61  ;;  %vm494_vm7 = vcmp.gt.f32.partialorder %v457_v62, 0.0  ;;  %v510_v3 = vmul.f32 0.2, %v457_v62 }
  0xd2   : > { %v1510_v5 = vsel %vm490_vm6, %v445_v59, %v506_v1 }
  0xd3   : > { %v1512_v6 = vsel %vm494_vm7, %v457_v62, %v510_v3 }
  0xd4   : > { %v468_v7 = vpop.f32.mrf.mxu2 }
  0xd5   : > { %v469_v8 = vadd.f32 %v468_v7, %v339_v0  ;;  %v480_v9 = vpop.f32.mrf.mxu3  ;;  %v447_v10 = vpop.f32.mrf.mxu0 }
  0xd6   : > { %v448_v11 = vadd.f32 %v447_v10, %v304_v39  ;;  %v459_v12 = vpop.f32.mrf.mxu1 }
  0xd7   : > { %vm498_vm8 = vcmp.gt.f32.partialorder %v469_v8, 0.0  ;;  %v514_v13 = vmul.f32 0.2, %v469_v8  ;;  %v460_v14 = vadd.f32 %v459_v12, %v324_v49  ;;  %v359_v15 = vpop.permute.xlu1 %358  ;;  %v354_v16 = vpop.permute.xlu0 %353 }
  0xd8   : > { %vm491_vm9 = vcmp.gt.f32.partialorder %v448_v11, 0.0  ;;  %v507_v17 = vmul.f32 0.2, %v448_v11  ;;  %v481_v18 = vadd.f32 %v480_v9, %v359_v15  ;;  %v478_v19 = vadd.f32 %v477_v57, %v354_v16 }
  0xd9   : > { %v1514_v20 = vsel %vm498_vm8, %v469_v8, %v514_v13  ;;  %vm495_vm10 = vcmp.gt.f32.partialorder %v460_v14, 0.0  ;;  %v511_v21 = vmul.f32 0.2, %v460_v14 }
  0xda   : > { %v1516_v22 = vsel %vm491_vm9, %v448_v11, %v507_v17  ;;  %vm502_vm11 = vcmp.gt.f32.partialorder %v481_v18, 0.0  ;;  %v518_v23 = vmul.f32 0.2, %v481_v18  ;;  %vm501_vm12 = vcmp.gt.f32.partialorder %v478_v19, 0.0 }
  0xdb   : > { %v1518_v24 = vsel %vm495_vm10, %v460_v14, %v511_v21  ;;  %v517_v25 = vmul.f32 0.2, %v478_v19 }
  0xdc   : > { %v1520_v27 = vsel %vm502_vm11, %v481_v18, %v518_v23  ;;  %v471_v28 = vpop.f32.mrf.mxu2 }
  0xdd   : > { %v1522_v29 = vsel %vm501_vm12, %v478_v19, %v517_v25  ;;  %v472_v30 = vadd.f32 %v471_v28, %v344_v63  ;;  %v483_v31 = vpop.f32.mrf.mxu3  ;;  %v450_v32 = vpop.f32.mrf.mxu0 }
  0xde   : > { %v484_v33 = vadd.f32 %v483_v31, %v364_v26  ;;  %v451_v34 = vadd.f32 %v450_v32, %v1500_v42  ;;  %v462_v35 = vpop.f32.mrf.mxu1 }
  0xdf   : > { %vm499_vm13 = vcmp.gt.f32.partialorder %v472_v30, 0.0  ;;  %v515_v36 = vmul.f32 0.2, %v472_v30  ;;  %v463_v37 = vadd.f32 %v462_v35, %v1502_v48  ;;  %v369_v46 = vpop.permute.xlu0 %368 }
  0xe0   : > { %vm503_vm14 = vcmp.gt.f32.partialorder %v484_v33, 0.0  ;;  %v519_v38 = vmul.f32 0.2, %v484_v33  ;;  %vm492_vm15 = vcmp.gt.f32.partialorder %v451_v34, 0.0  ;;  %v508_v39 = vmul.f32 0.2, %v451_v34 }
  0xe1   : > { %v1526_v40 = vsel %vm499_vm13, %v472_v30, %v515_v36  ;;  %vm496_vm0 = vcmp.gt.f32.partialorder %v463_v37, 0.0  ;;  %v512_v41 = vmul.f32 0.2, %v463_v37 }
  0xe2   : > { %v1528_v43 = vsel %vm503_vm14, %v484_v33, %v519_v38  ;;  %v1530_v44 = vsel %vm492_vm15, %v451_v34, %v508_v39 }
  0xe3   : > { %v1532_v45 = vsel %vm496_vm0, %v463_v37, %v512_v41 }
  0xe4   : > { %v474_v42 = vpop.f32.mrf.mxu2 }
  0xe5   : > { %v475_v47 = vadd.f32 %v474_v42, %v349_v4  ;;  %v486_v49 = vpop.f32.mrf.mxu3 }
  0xe6   : > { %v487_v50 = vadd.f32 %v486_v49, %v369_v46  ;;  %540 = sbr.rel (%p1132_p9) target bundleno = 435 (0x1b3), region = 78 }
  0xe7   : > { %vm500_vm1 = vcmp.gt.f32.partialorder %v475_v47, 0.0  ;;  %v516_v48 = vmul.f32 0.2, %v475_v47 }
  0xe8   : > { %vm504_vm2 = vcmp.gt.f32.partialorder %v487_v50, 0.0  ;;  %v520_v51 = vmul.f32 0.2, %v487_v50 }
  0xe9   : > { %v1534_v52 = vsel %vm500_vm1, %v475_v47, %v516_v48 }
  0xea   : > { %v1536_v55 = vsel %vm504_vm2, %v487_v50, %v520_v51 }
  0xeb   : > { %561 = vadd.xlane.f32.xlu1 %v1516_v22  ;;  %557 = vadd.xlane.f32.xlu0 %v1504_v53  ;;  %v638_v56 = vmul.f32 %v1504_v53, %v1504_v53  ;;  %v639_v57 = vmul.f32 %v1510_v5, %v1510_v5  ;;  %v640_v58 = vmul.f32 %v1516_v22, %v1516_v22  ;;  %v543_v11 = vld [vmem:[%s2386_s3 + $0x10] sm:$0xff]  ;;  %v541_v12 = vld [vmem:[%s2386_s3] sm:$0xff]  ;;  %vm605_vm3 = vcmask 7168   ;;  %v544_v21 = vld [vmem:[%s2386_s3 + $0x18] sm:$0xff] }
  0xec   : > { %565 = vadd.xlane.f32.xlu2 %v1506_v54  ;;  %v641_v59 = vmul.f32 %v1530_v44, %v1530_v44  ;;  %v642_v60 = vmul.f32 %v1506_v54, %v1506_v54  ;;  %v643_v61 = vmul.f32 %v1512_v6, %v1512_v6  ;;  %v644_v62 = vmul.f32 %v1518_v24, %v1518_v24  ;;  %v545_v13 = vld [vmem:[%s2386_s3 + $0x20] sm:$0xff]  ;;  %v542_v23 = vld [vmem:[%s2386_s3 + $0x8] sm:$0xff]  ;;  %v548_v34 = vld [vmem:[%s2386_s3 + $0x38] sm:$0xff] }
  0xed   : > { %v645_v63 = vmul.f32 %v1532_v45, %v1532_v45  ;;  %v646_v0 = vmul.f32 %v1508_v2, %v1508_v2  ;;  %v647_v1 = vmul.f32 %v1514_v20, %v1514_v20  ;;  %v648_v3 = vmul.f32 %v1526_v40, %v1526_v40  ;;  %v546_v25 = vld [vmem:[%s2386_s3 + $0x28] sm:$0xff]  ;;  %v547_v35 = vld [vmem:[%s2386_s3 + $0x30] sm:$0xff]  ;;  %v549_v36 = vld [vmem:[%s2386_s3 + $0x40] sm:$0xff] }
  0xee   : > { %v649_v4 = vmul.f32 %v1534_v52, %v1534_v52  ;;  %v650_v7 = vmul.f32 %v1522_v29, %v1522_v29  ;;  %v651_v8 = vmul.f32 %v1520_v27, %v1520_v27  ;;  %v652_v9 = vmul.f32 %v1528_v43, %v1528_v43  ;;  %v551_v47 = vld [vmem:[%s2386_s3 + $0x50] sm:$0xff]  ;;  %v550_v49 = vld [vmem:[%s2386_s3 + $0x48] sm:$0xff]  ;;  %v552_v50 = vld [vmem:[%s2386_s3 + $0x58] sm:$0xff] }
  0xef   : > { %v653_v10 = vmul.f32 %v1536_v55, %v1536_v55 }
  0xf3   : > { %563 = vadd.xlane.f32.xlu1 %v1530_v44  ;;  %559 = vadd.xlane.f32.xlu0 %v1510_v5 }
  0xf4   : > { %567 = vadd.xlane.f32.xlu2 %v1512_v6 }
  0xfb   : > { %571 = vadd.xlane.f32.xlu1 %v1532_v45  ;;  %569 = vadd.xlane.f32.xlu0 %v1518_v24 }
  0xfc   : > { %573 = vadd.xlane.f32.xlu2 %v1508_v2 }
 0x103   : > { %577 = vadd.xlane.f32.xlu1 %v1526_v40  ;;  %575 = vadd.xlane.f32.xlu0 %v1514_v20 }
 0x104   : > { %579 = vadd.xlane.f32.xlu2 %v1534_v52 }
 0x10b   : > { %583 = vadd.xlane.f32.xlu1 %v1520_v27  ;;  %581 = vadd.xlane.f32.xlu0 %v1522_v29 }
 0x10c   : > { %585 = vadd.xlane.f32.xlu2 %v1528_v43 }
 0x113   : > { %587 = vadd.xlane.f32.xlu0 %v1536_v55  ;;  %654 = vadd.xlane.f32.xlu1 %v638_v56 }
 0x114   : > { %656 = vadd.xlane.f32.xlu2 %v639_v57 }
 0x11b   : > { %658 = vadd.xlane.f32.xlu0 %v640_v58  ;;  %660 = vadd.xlane.f32.xlu1 %v641_v59 }
 0x11c   : > { %662 = vadd.xlane.f32.xlu2 %v642_v60  ;;  %v554_v60 = vld [vmem:[%s2386_s3 + $0x68] sm:$0xff] }
 0x123   : > { %664 = vadd.xlane.f32.xlu0 %v643_v61  ;;  %666 = vadd.xlane.f32.xlu1 %v644_v62  ;;  %v553_v61 = vld [vmem:[%s2386_s3 + $0x60] sm:$0xff]  ;;  %v555_v62 = vld [vmem:[%s2386_s3 + $0x70] sm:$0xff] }
 0x124   : > { %668 = vadd.xlane.f32.xlu2 %v645_v63 }
 0x12b   : > { %670 = vadd.xlane.f32.xlu0 %v646_v0  ;;  %672 = vadd.xlane.f32.xlu1 %v647_v1 }
 0x12c   : > { %674 = vadd.xlane.f32.xlu2 %v648_v3 }
 0x133   : > { %676 = vadd.xlane.f32.xlu0 %v649_v4  ;;  %678 = vadd.xlane.f32.xlu1 %v650_v7 }
 0x134   : > { %680 = vadd.xlane.f32.xlu2 %v651_v8  ;;  %v556_v8 = vld [vmem:[%s2386_s3 + $0x78] sm:$0xff] }
 0x13b   : > { %682 = vadd.xlane.f32.xlu0 %v652_v9  ;;  %684 = vadd.xlane.f32.xlu1 %v653_v10  ;;  %v622_v9 = vld [vmem:[%s2387_s4] sm:$0xff]  ;;  %v623_v10 = vld [vmem:[%s2387_s4 + $0x8] sm:$0xff] }
 0x15e   : > { %v562_v14 = vpop.xlane.xlu1 %561  ;;  %v558_v15 = vpop.xlane.xlu0 %557 }
 0x15f   : > { %v591_v16 = vadd.f32 %v562_v14, %v543_v11  ;;  %v589_v17 = vadd.f32 %v558_v15, %v541_v12  ;;  %v566_v18 = vpop.xlane.xlu2 %565 }
 0x160   : > { %v593_v19 = vadd.f32 %v566_v18, %v545_v13  ;;  %v625_v18 = vld [vmem:[%s2387_s4 + $0x18] sm:$0xff] }
 0x161   : > { %608 = vst.msk [vmem:[%s2386_s3 + $0x10] sm:$0xff] %vm605_vm3, %v591_v16 }
 0x162   : > { %606 = vst.msk [vmem:[%s2386_s3] sm:$0xff] %vm605_vm3, %v589_v17  ;;  %v624_v17 = vld [vmem:[%s2387_s4 + $0x10] sm:$0xff] }
 0x163   : > { %610 = vst.msk [vmem:[%s2386_s3 + $0x20] sm:$0xff] %vm605_vm3, %v593_v19  ;;  %v626_v19 = vld [vmem:[%s2387_s4 + $0x20] sm:$0xff] }
 0x166   : > { %v564_v26 = vpop.xlane.xlu1 %563  ;;  %v560_v28 = vpop.xlane.xlu0 %559 }
 0x167   : > { %v592_v30 = vadd.f32 %v564_v26, %v544_v21  ;;  %v590_v31 = vadd.f32 %v560_v28, %v542_v23  ;;  %v568_v32 = vpop.xlane.xlu2 %567 }
 0x168   : > { %v594_v33 = vadd.f32 %v568_v32, %v546_v25  ;;  %v628_v32 = vld [vmem:[%s2387_s4 + $0x30] sm:$0xff] }
 0x169   : > { %609 = vst.msk [vmem:[%s2386_s3 + $0x18] sm:$0xff] %vm605_vm3, %v592_v30 }
 0x16a   : > { %607 = vst.msk [vmem:[%s2386_s3 + $0x8] sm:$0xff] %vm605_vm3, %v590_v31  ;;  %v627_v31 = vld [vmem:[%s2387_s4 + $0x28] sm:$0xff] }
 0x16b   : > { %611 = vst.msk [vmem:[%s2386_s3 + $0x28] sm:$0xff] %vm605_vm3, %v594_v33  ;;  %v629_v33 = vld [vmem:[%s2387_s4 + $0x38] sm:$0xff] }
 0x16e   : > { %v572_v37 = vpop.xlane.xlu1 %571  ;;  %v570_v38 = vpop.xlane.xlu0 %569 }
 0x16f   : > { %v596_v39 = vadd.f32 %v572_v37, %v548_v34  ;;  %v595_v41 = vadd.f32 %v570_v38, %v547_v35  ;;  %v574_v42 = vpop.xlane.xlu2 %573 }
 0x170   : > { %v597_v46 = vadd.f32 %v574_v42, %v549_v36  ;;  %v631_v42 = vld [vmem:[%s2387_s4 + $0x48] sm:$0xff] }
 0x171   : > { %613 = vst.msk [vmem:[%s2386_s3 + $0x38] sm:$0xff] %vm605_vm3, %v596_v39 }
 0x172   : > { %612 = vst.msk [vmem:[%s2386_s3 + $0x30] sm:$0xff] %vm605_vm3, %v595_v41  ;;  %v630_v41 = vld [vmem:[%s2387_s4 + $0x40] sm:$0xff] }
 0x173   : > { %614 = vst.msk [vmem:[%s2386_s3 + $0x40] sm:$0xff] %vm605_vm3, %v597_v46  ;;  %v632_v46 = vld [vmem:[%s2387_s4 + $0x50] sm:$0xff] }
 0x176   : > { %v578_v48 = vpop.xlane.xlu1 %577  ;;  %v576_v51 = vpop.xlane.xlu0 %575 }
 0x177   : > { %v599_v56 = vadd.f32 %v578_v48, %v551_v47  ;;  %v598_v57 = vadd.f32 %v576_v51, %v550_v49  ;;  %v580_v58 = vpop.xlane.xlu2 %579 }
 0x178   : > { %v600_v59 = vadd.f32 %v580_v58, %v552_v50  ;;  %v634_v58 = vld [vmem:[%s2387_s4 + $0x60] sm:$0xff] }
 0x179   : > { %616 = vst.msk [vmem:[%s2386_s3 + $0x50] sm:$0xff] %vm605_vm3, %v599_v56 }
 0x17a   : > { %615 = vst.msk [vmem:[%s2386_s3 + $0x48] sm:$0xff] %vm605_vm3, %v598_v57  ;;  %v633_v57 = vld [vmem:[%s2387_s4 + $0x58] sm:$0xff] }
 0x17b   : > { %617 = vst.msk [vmem:[%s2386_s3 + $0x58] sm:$0xff] %vm605_vm3, %v600_v59  ;;  %v635_v59 = vld [vmem:[%s2387_s4 + $0x68] sm:$0xff] }
 0x17e   : > { %v584_v63 = vpop.xlane.xlu1 %583  ;;  %v582_v0 = vpop.xlane.xlu0 %581 }
 0x17f   : > { %v602_v1 = vadd.f32 %v584_v63, %v554_v60  ;;  %v601_v3 = vadd.f32 %v582_v0, %v553_v61  ;;  %v586_v4 = vpop.xlane.xlu2 %585 }
 0x180   : > { %v603_v7 = vadd.f32 %v586_v4, %v555_v62  ;;  %v637_v4 = vld [vmem:[%s2387_s4 + $0x78] sm:$0xff] }
 0x181   : > { %619 = vst.msk [vmem:[%s2386_s3 + $0x68] sm:$0xff] %vm605_vm3, %v602_v1 }
 0x182   : > { %618 = vst.msk [vmem:[%s2386_s3 + $0x60] sm:$0xff] %vm605_vm3, %v601_v3  ;;  %v636_v3 = vld [vmem:[%s2387_s4 + $0x70] sm:$0xff] }
 0x183   : > { %620 = vst.msk [vmem:[%s2386_s3 + $0x70] sm:$0xff] %vm605_vm3, %v603_v7 }
 0x186   : > { %v588_v11 = vpop.xlane.xlu0 %587  ;;  %v655_v12 = vpop.xlane.xlu1 %654 }
 0x187   : > { %v604_v13 = vadd.f32 %v588_v11, %v556_v8  ;;  %v686_v14 = vadd.f32 %v655_v12, %v622_v9  ;;  %v657_v15 = vpop.xlane.xlu2 %656 }
 0x188   : > { %v687_v16 = vadd.f32 %v657_v15, %v623_v10 }
 0x189   : > { %621 = vst.msk [vmem:[%s2386_s3 + $0x78] sm:$0xff] %vm605_vm3, %v604_v13 }
 0x18a   : > { %702 = vst.msk [vmem:[%s2387_s4] sm:$0xff] %vm605_vm3, %v686_v14 }
 0x18b   : > { %703 = vst.msk [vmem:[%s2387_s4 + $0x8] sm:$0xff] %vm605_vm3, %v687_v16 }
 0x18e   : > { %v659_v21 = vpop.xlane.xlu0 %658  ;;  %v661_v23 = vpop.xlane.xlu1 %660 }
 0x18f   : > { %v688_v25 = vadd.f32 %v659_v21, %v624_v17  ;;  %v689_v26 = vadd.f32 %v661_v23, %v625_v18  ;;  %v663_v28 = vpop.xlane.xlu2 %662 }
 0x190   : > { %v690_v30 = vadd.f32 %v663_v28, %v626_v19 }
 0x191   : > { %704 = vst.msk [vmem:[%s2387_s4 + $0x10] sm:$0xff] %vm605_vm3, %v688_v25 }
 0x192   : > { %705 = vst.msk [vmem:[%s2387_s4 + $0x18] sm:$0xff] %vm605_vm3, %v689_v26 }
 0x193   : > { %706 = vst.msk [vmem:[%s2387_s4 + $0x20] sm:$0xff] %vm605_vm3, %v690_v30 }
 0x196   : > { %v665_v34 = vpop.xlane.xlu0 %664  ;;  %v667_v35 = vpop.xlane.xlu1 %666 }
 0x197   : > { %v691_v36 = vadd.f32 %v665_v34, %v627_v31  ;;  %v692_v37 = vadd.f32 %v667_v35, %v628_v32  ;;  %v669_v38 = vpop.xlane.xlu2 %668 }
 0x198   : > { %v693_v39 = vadd.f32 %v669_v38, %v629_v33 }
 0x199   : > { %707 = vst.msk [vmem:[%s2387_s4 + $0x28] sm:$0xff] %vm605_vm3, %v691_v36 }
 0x19a   : > { %708 = vst.msk [vmem:[%s2387_s4 + $0x30] sm:$0xff] %vm605_vm3, %v692_v37 }
 0x19b   : > { %709 = vst.msk [vmem:[%s2387_s4 + $0x38] sm:$0xff] %vm605_vm3, %v693_v39 }
 0x19e   : > { %v671_v47 = vpop.xlane.xlu0 %670  ;;  %v673_v49 = vpop.xlane.xlu1 %672 }
 0x19f   : > { %v694_v50 = vadd.f32 %v671_v47, %v630_v41  ;;  %v695_v48 = vadd.f32 %v673_v49, %v631_v42  ;;  %v675_v51 = vpop.xlane.xlu2 %674 }
 0x1a0   : > { %v696_v56 = vadd.f32 %v675_v51, %v632_v46 }
 0x1a1   : > { %710 = vst.msk [vmem:[%s2387_s4 + $0x40] sm:$0xff] %vm605_vm3, %v694_v50 }
 0x1a2   : > { %711 = vst.msk [vmem:[%s2387_s4 + $0x48] sm:$0xff] %vm605_vm3, %v695_v48 }
 0x1a3   : > { %712 = vst.msk [vmem:[%s2387_s4 + $0x50] sm:$0xff] %vm605_vm3, %v696_v56 }
 0x1a6   : > { %v677_v60 = vpop.xlane.xlu0 %676  ;;  %v679_v61 = vpop.xlane.xlu1 %678 }
 0x1a7   : > { %v697_v62 = vadd.f32 %v677_v60, %v633_v57  ;;  %v698_v63 = vadd.f32 %v679_v61, %v634_v58  ;;  %v681_v0 = vpop.xlane.xlu2 %680 }
 0x1a8   : > { %v699_v1 = vadd.f32 %v681_v0, %v635_v59 }
 0x1a9   : > { %713 = vst.msk [vmem:[%s2387_s4 + $0x58] sm:$0xff] %vm605_vm3, %v697_v62 }
 0x1aa   : > { %714 = vst.msk [vmem:[%s2387_s4 + $0x60] sm:$0xff] %vm605_vm3, %v698_v63 }
 0x1ab   : > { %715 = vst.msk [vmem:[%s2387_s4 + $0x68] sm:$0xff] %vm605_vm3, %v699_v1 }
 0x1ae   : > { %v683_v7 = vpop.xlane.xlu0 %682  ;;  %v685_v8 = vpop.xlane.xlu1 %684 }
 0x1af   : > { %v700_v9 = vadd.f32 %v683_v7, %v636_v3  ;;  %v701_v10 = vadd.f32 %v685_v8, %v637_v4 }
 0x1b1   : > { %716 = vst.msk [vmem:[%s2387_s4 + $0x70] sm:$0xff] %vm605_vm3, %v700_v9 }
 0x1b2   : > { %717 = vst.msk [vmem:[%s2387_s4 + $0x78] sm:$0xff] %vm605_vm3, %v701_v10 }
 0x1b3 PF: > { %p1133_p10 = scmp.ne.s32.totalorder %s1236_s18, 1 }
 0x1b4   : > { %s1134_s29 = sshll.u32 (!%p1133_p10), %s1236_s18, 7 }
 0x1b5   : > { %721 = sbr.rel (%p1133_p10) target bundleno = 666 (0x29a), region = 82 }
 0x1ba   : > { %v723_v11 = vlaneseq  ;;  %v725_v12 = vstv %s1134_s29  ;;  %v750_v36 = vld [vmem:[%s2386_s3 + $0x20] sm:$0xff]  ;;  %v748_v37 = vld [vmem:[%s2386_s3 + $0x10] sm:$0xff]  ;;  %vm810_vm5 = vcmask 7168   ;;  %v751_v50 = vld [vmem:[%s2386_s3 + $0x28] sm:$0xff] }
 0x1bb   : > { %v746_v38 = vld [vmem:[%s2386_s3] sm:$0xff]  ;;  %v749_v48 = vld [vmem:[%s2386_s3 + $0x18] sm:$0xff]  ;;  %v747_v59 = vld [vmem:[%s2386_s3 + $0x8] sm:$0xff] }
 0x1bc   : > { %v724_v13 = vand.u32 127, %v723_v11  ;;  %v754_v7 = vld [vmem:[%s2386_s3 + $0x40] sm:$0xff]  ;;  %v753_v8 = vld [vmem:[%s2386_s3 + $0x38] sm:$0xff]  ;;  %v752_v11 = vld [vmem:[%s2386_s3 + $0x30] sm:$0xff] }
 0x1be   : > { %v726_v14 = vadd.s32 %v725_v12, %v724_v13 }
 0x1c0   : > { %vm727_vm4 = vcmp.lt.s32.totalorder %v726_v14, 200 }
 0x1c1   : > { %v734_v15 = vsel %vm727_vm4, %v1506_v54, 0.0  ;;  %v732_v16 = vsel %vm727_vm4, %v1516_v22, 0.0  ;;  %v730_v17 = vsel %vm727_vm4, %v1504_v53, 0.0  ;;  %v735_v18 = vsel %vm727_vm4, %v1512_v6, 0.0 }
 0x1c2   : > { %770 = vadd.xlane.f32.xlu2 %v734_v15  ;;  %766 = vadd.xlane.f32.xlu1 %v732_v16  ;;  %v733_v19 = vsel %vm727_vm4, %v1530_v44, 0.0  ;;  %v731_v21 = vsel %vm727_vm4, %v1510_v5, 0.0  ;;  %v738_v54 = vsel %vm727_vm4, %v1508_v2, 0.0  ;;  %v737_v53 = vsel %vm727_vm4, %v1532_v45, 0.0 }
 0x1c3   : > { %762 = vadd.xlane.f32.xlu0 %v730_v17  ;;  %v736_v22 = vsel %vm727_vm4, %v1518_v24, 0.0  ;;  %v741_v6 = vsel %vm727_vm4, %v1534_v52, 0.0  ;;  %v740_v5 = vsel %vm727_vm4, %v1526_v40, 0.0  ;;  %v739_v44 = vsel %vm727_vm4, %v1514_v20, 0.0 }
 0x1c4   : > { %v744_v2 = vsel %vm727_vm4, %v1528_v43, 0.0  ;;  %v743_v24 = vsel %vm727_vm4, %v1520_v27, 0.0  ;;  %v742_v45 = vsel %vm727_vm4, %v1522_v29, 0.0  ;;  %v844_v52 = vmul.f32 %v731_v21, %v731_v21 }
 0x1c5   : > { %v843_v40 = vmul.f32 %v730_v17, %v730_v17  ;;  %v745_v20 = vsel %vm727_vm4, %v1536_v55, 0.0  ;;  %v847_v23 = vmul.f32 %v734_v15, %v734_v15  ;;  %v846_v25 = vmul.f32 %v733_v19, %v733_v19 }
 0x1c6   : > { %v845_v43 = vmul.f32 %v732_v16, %v732_v16  ;;  %v850_v27 = vmul.f32 %v737_v53, %v737_v53  ;;  %v849_v26 = vmul.f32 %v736_v22, %v736_v22  ;;  %v848_v29 = vmul.f32 %v735_v18, %v735_v18 }
 0x1c7   : > { %v853_v28 = vmul.f32 %v740_v5, %v740_v5  ;;  %v852_v30 = vmul.f32 %v739_v44, %v739_v44  ;;  %v851_v31 = vmul.f32 %v738_v54, %v738_v54  ;;  %v856_v55 = vmul.f32 %v743_v24, %v743_v24 }
 0x1c8   : > { %v855_v32 = vmul.f32 %v742_v45, %v742_v45  ;;  %v854_v33 = vmul.f32 %v741_v6, %v741_v6  ;;  %v858_v34 = vmul.f32 %v745_v20, %v745_v20  ;;  %v857_v35 = vmul.f32 %v744_v2, %v744_v2 }
 0x1ca   : > { %772 = vadd.xlane.f32.xlu2 %v735_v18  ;;  %768 = vadd.xlane.f32.xlu1 %v733_v19 }
 0x1cb   : > { %764 = vadd.xlane.f32.xlu0 %v731_v21  ;;  %v757_v21 = vld [vmem:[%s2386_s3 + $0x58] sm:$0xff] }
 0x1d2   : > { %778 = vadd.xlane.f32.xlu2 %v738_v54  ;;  %776 = vadd.xlane.f32.xlu1 %v737_v53  ;;  %v756_v54 = vld [vmem:[%s2386_s3 + $0x50] sm:$0xff] }
 0x1d3   : > { %774 = vadd.xlane.f32.xlu0 %v736_v22 }
 0x1da   : > { %784 = vadd.xlane.f32.xlu2 %v741_v6  ;;  %782 = vadd.xlane.f32.xlu1 %v740_v5 }
 0x1db   : > { %780 = vadd.xlane.f32.xlu0 %v739_v44  ;;  %v755_v44 = vld [vmem:[%s2386_s3 + $0x48] sm:$0xff] }
 0x1e2   : > { %790 = vadd.xlane.f32.xlu2 %v744_v2  ;;  %788 = vadd.xlane.f32.xlu1 %v743_v24 }
 0x1e3   : > { %786 = vadd.xlane.f32.xlu0 %v742_v45 }
 0x1ea   : > { %861 = vadd.xlane.f32.xlu2 %v844_v52  ;;  %859 = vadd.xlane.f32.xlu1 %v843_v40 }
 0x1eb   : > { %792 = vadd.xlane.f32.xlu0 %v745_v20 }
 0x1f2   : > { %867 = vadd.xlane.f32.xlu2 %v847_v23  ;;  %865 = vadd.xlane.f32.xlu1 %v846_v25 }
 0x1f3   : > { %863 = vadd.xlane.f32.xlu0 %v845_v43 }
 0x1fa   : > { %873 = vadd.xlane.f32.xlu2 %v850_v27  ;;  %871 = vadd.xlane.f32.xlu1 %v849_v26  ;;  %v760_v27 = vld [vmem:[%s2386_s3 + $0x70] sm:$0xff]  ;;  %v759_v26 = vld [vmem:[%s2386_s3 + $0x68] sm:$0xff] }
 0x1fb   : > { %869 = vadd.xlane.f32.xlu0 %v848_v29 }
 0x202   : > { %879 = vadd.xlane.f32.xlu2 %v853_v28  ;;  %877 = vadd.xlane.f32.xlu1 %v852_v30 }
 0x203   : > { %875 = vadd.xlane.f32.xlu0 %v851_v31  ;;  %v758_v31 = vld [vmem:[%s2386_s3 + $0x60] sm:$0xff] }
 0x20a   : > { %885 = vadd.xlane.f32.xlu2 %v856_v55  ;;  %883 = vadd.xlane.f32.xlu1 %v855_v32 }
 0x20b   : > { %881 = vadd.xlane.f32.xlu0 %v854_v33 }
 0x212   : > { %889 = vadd.xlane.f32.xlu1 %v858_v34 }
 0x213   : > { %887 = vadd.xlane.f32.xlu0 %v857_v35 }
 0x235   : > { %v771_v39 = vpop.xlane.xlu2 %770  ;;  %v767_v41 = vpop.xlane.xlu1 %766 }
 0x236   : > { %v798_v42 = vadd.f32 %v771_v39, %v750_v36  ;;  %v796_v46 = vadd.f32 %v767_v41, %v748_v37  ;;  %v763_v47 = vpop.xlane.xlu0 %762  ;;  %v828_v41 = vld [vmem:[%s2387_s4 + $0x8] sm:$0xff] }
 0x237   : > { %v794_v49 = vadd.f32 %v763_v47, %v746_v38 }
 0x238   : > { %815 = vst.msk [vmem:[%s2386_s3 + $0x20] sm:$0xff] %vm810_vm5, %v798_v42 }
 0x239   : > { %813 = vst.msk [vmem:[%s2386_s3 + $0x10] sm:$0xff] %vm810_vm5, %v796_v46  ;;  %v761_v46 = vld [vmem:[%s2386_s3 + $0x78] sm:$0xff] }
 0x23a   : > { %811 = vst.msk [vmem:[%s2386_s3] sm:$0xff] %vm810_vm5, %v794_v49  ;;  %v827_v49 = vld [vmem:[%s2387_s4] sm:$0xff] }
 0x23d   : > { %v773_v51 = vpop.xlane.xlu2 %772  ;;  %v769_v56 = vpop.xlane.xlu1 %768 }
 0x23e   : > { %v799_v57 = vadd.f32 %v773_v51, %v751_v50  ;;  %v797_v58 = vadd.f32 %v769_v56, %v749_v48  ;;  %v765_v60 = vpop.xlane.xlu0 %764 }
 0x23f   : > { %v927_v61 = vld [vmem:[%s2386_s3 + $0x20] sm:$0xff]  ;;  %v795_v3 = vadd.f32 %v765_v60, %v747_v59 }
 0x240   : > { %v1878_v62 = vmul.f32 0.005, %v927_v61  ;;  %v925_v63 = vld [vmem:[%s2386_s3 + $0x10] sm:$0xff]  ;;  %816 = vst.msk [vmem:[%s2386_s3 + $0x28] sm:$0xff] %vm810_vm5, %v799_v57 }
 0x241   : > { %v1887_v0 = vmul.f32 0.005, %v925_v63  ;;  %v923_v1 = vld [vmem:[%s2386_s3] sm:$0xff]  ;;  %814 = vst.msk [vmem:[%s2386_s3 + $0x18] sm:$0xff] %vm810_vm5, %v797_v58 }
 0x242   : > { %1023 = vst.msk [vmem:[%s2386_s3 + $0x20] sm:$0xff] %vm810_vm5, %v1878_v62  ;;  %v1901_v4 = vmul.f32 0.005, %v923_v1  ;;  %v831_v1 = vld [vmem:[%s2387_s4 + $0x20] sm:$0xff] }
 0x243   : > { %1021 = vst.msk [vmem:[%s2386_s3 + $0x10] sm:$0xff] %vm810_vm5, %v1887_v0 }
 0x244   : > { %1019 = vst.msk [vmem:[%s2386_s3] sm:$0xff] %vm810_vm5, %v1901_v4 }
 0x245   : > { %812 = vst.msk [vmem:[%s2386_s3 + $0x8] sm:$0xff] %vm810_vm5, %v795_v3  ;;  %v779_v9 = vpop.xlane.xlu2 %778  ;;  %v777_v10 = vpop.xlane.xlu1 %776  ;;  %v830_v3 = vld [vmem:[%s2387_s4 + $0x18] sm:$0xff] }
 0x246   : > { %v802_v12 = vadd.f32 %v779_v9, %v754_v7  ;;  %v801_v13 = vadd.f32 %v777_v10, %v753_v8  ;;  %v775_v14 = vpop.xlane.xlu0 %774  ;;  %v829_v8 = vld [vmem:[%s2387_s4 + $0x10] sm:$0xff] }
 0x247   : > { %v928_v15 = vld [vmem:[%s2386_s3 + $0x28] sm:$0xff]  ;;  %v800_v18 = vadd.f32 %v775_v14, %v752_v11 }
 0x248   : > { %v1929_v16 = vmul.f32 0.005, %v928_v15  ;;  %v926_v17 = vld [vmem:[%s2386_s3 + $0x18] sm:$0xff]  ;;  %819 = vst.msk [vmem:[%s2386_s3 + $0x40] sm:$0xff] %vm810_vm5, %v802_v12 }
 0x249   : > { %v1938_v19 = vmul.f32 0.005, %v926_v17  ;;  %818 = vst.msk [vmem:[%s2386_s3 + $0x38] sm:$0xff] %vm810_vm5, %v801_v13 }
 0x24a   : > { %1024 = vst.msk [vmem:[%s2386_s3 + $0x28] sm:$0xff] %vm810_vm5, %v1929_v16 }
 0x24b   : > { %1022 = vst.msk [vmem:[%s2386_s3 + $0x18] sm:$0xff] %vm810_vm5, %v1938_v19 }
 0x24c   : > { %v924_v53 = vld [vmem:[%s2386_s3 + $0x8] sm:$0xff]  ;;  %817 = vst.msk [vmem:[%s2386_s3 + $0x30] sm:$0xff] %vm810_vm5, %v800_v18 }
 0x24d   : > { %v1967_v22 = vmul.f32 0.005, %v924_v53  ;;  %v785_v6 = vpop.xlane.xlu2 %784  ;;  %v783_v5 = vpop.xlane.xlu1 %782 }
 0x24e   : > { %v805_v2 = vadd.f32 %v785_v6, %v757_v21  ;;  %v804_v24 = vadd.f32 %v783_v5, %v756_v54  ;;  %v781_v45 = vpop.xlane.xlu0 %780  ;;  %v834_v6 = vld [vmem:[%s2387_s4 + $0x38] sm:$0xff]  ;;  %v987_v5 = vmul.f32 %v1901_v4, %v1901_v4 }
 0x24f   : > { %1020 = vst.msk [vmem:[%s2386_s3 + $0x8] sm:$0xff] %vm810_vm5, %v1967_v22  ;;  %v931_v52 = vld [vmem:[%s2386_s3 + $0x40] sm:$0xff]  ;;  %v803_v23 = vadd.f32 %v781_v45, %v755_v44  ;;  %v988_v17 = vmul.f32 %v1967_v22, %v1967_v22  ;;  %v833_v45 = vld [vmem:[%s2387_s4 + $0x30] sm:$0xff] }
 0x250   : > { %v1980_v40 = vmul.f32 0.005, %v931_v52  ;;  %v930_v20 = vld [vmem:[%s2386_s3 + $0x38] sm:$0xff]  ;;  %822 = vst.msk [vmem:[%s2386_s3 + $0x58] sm:$0xff] %vm810_vm5, %v805_v2 }
 0x251   : > { %v1989_v25 = vmul.f32 0.005, %v930_v20  ;;  %821 = vst.msk [vmem:[%s2386_s3 + $0x50] sm:$0xff] %vm810_vm5, %v804_v24  ;;  %v832_v24 = vld [vmem:[%s2387_s4 + $0x28] sm:$0xff] }
 0x252   : > { %1027 = vst.msk [vmem:[%s2386_s3 + $0x40] sm:$0xff] %vm810_vm5, %v1980_v40 }
 0x253   : > { %1026 = vst.msk [vmem:[%s2386_s3 + $0x38] sm:$0xff] %vm810_vm5, %v1989_v25  ;;  %v929_v43 = vld [vmem:[%s2386_s3 + $0x30] sm:$0xff] }
 0x254   : > { %v2014_v29 = vmul.f32 0.005, %v929_v43  ;;  %820 = vst.msk [vmem:[%s2386_s3 + $0x48] sm:$0xff] %vm810_vm5, %v803_v23 }
 0x255   : > { %v791_v28 = vpop.xlane.xlu2 %790  ;;  %v789_v30 = vpop.xlane.xlu1 %788 }
 0x256   : > { %1025 = vst.msk [vmem:[%s2386_s3 + $0x30] sm:$0xff] %vm810_vm5, %v2014_v29  ;;  %v808_v55 = vadd.f32 %v791_v28, %v760_v27  ;;  %v807_v32 = vadd.f32 %v789_v30, %v759_v26  ;;  %v787_v33 = vpop.xlane.xlu0 %786  ;;  %v991_v30 = vmul.f32 %v1878_v62, %v1878_v62  ;;  %v990_v62 = vmul.f32 %v1938_v19, %v1938_v19  ;;  %v835_v19 = vld [vmem:[%s2387_s4 + $0x40] sm:$0xff] }
 0x257   : > { %v934_v34 = vld [vmem:[%s2386_s3 + $0x58] sm:$0xff]  ;;  %v806_v37 = vadd.f32 %v787_v33, %v758_v31  ;;  %v989_v33 = vmul.f32 %v1887_v0, %v1887_v0 }
 0x258   : > { %v2031_v35 = vmul.f32 0.005, %v934_v34  ;;  %v933_v36 = vld [vmem:[%s2386_s3 + $0x50] sm:$0xff]  ;;  %825 = vst.msk [vmem:[%s2386_s3 + $0x70] sm:$0xff] %vm810_vm5, %v808_v55 }
 0x259   : > { %v2040_v38 = vmul.f32 0.005, %v933_v36  ;;  %824 = vst.msk [vmem:[%s2386_s3 + $0x68] sm:$0xff] %vm810_vm5, %v807_v32 }
 0x25a   : > { %1030 = vst.msk [vmem:[%s2386_s3 + $0x58] sm:$0xff] %vm810_vm5, %v2031_v35 }
 0x25b   : > { %1029 = vst.msk [vmem:[%s2386_s3 + $0x50] sm:$0xff] %vm810_vm5, %v2040_v38  ;;  %v932_v39 = vld [vmem:[%s2386_s3 + $0x48] sm:$0xff] }
 0x25c   : > { %v2062_v42 = vmul.f32 0.005, %v932_v39  ;;  %823 = vst.msk [vmem:[%s2386_s3 + $0x60] sm:$0xff] %vm810_vm5, %v806_v37 }
 0x25d   : > { %v862_v47 = vpop.xlane.xlu2 %861  ;;  %v860_v50 = vpop.xlane.xlu1 %859 }
 0x25e   : > { %1028 = vst.msk [vmem:[%s2386_s3 + $0x48] sm:$0xff] %vm810_vm5, %v2062_v42  ;;  %v892_v48 = vadd.f32 %v862_v47, %v828_v41  ;;  %v793_v51 = vpop.xlane.xlu0 %792  ;;  %v891_v60 = vadd.f32 %v860_v50, %v827_v49  ;;  %v837_v41 = vld [vmem:[%s2387_s4 + $0x50] sm:$0xff]  ;;  %v836_v49 = vld [vmem:[%s2387_s4 + $0x48] sm:$0xff] }
 0x25f   : > { %v937_v56 = vld [vmem:[%s2386_s3 + $0x70] sm:$0xff]  ;;  %v809_v57 = vadd.f32 %v793_v51, %v761_v46 }
 0x260   : > { %v2082_v58 = vmul.f32 0.005, %v937_v56  ;;  %v936_v59 = vld [vmem:[%s2386_s3 + $0x68] sm:$0xff]  ;;  %908 = vst.msk [vmem:[%s2387_s4 + $0x8] sm:$0xff] %vm810_vm5, %v892_v48 }
 0x261   : > { %v2091_v61 = vmul.f32 0.005, %v936_v59  ;;  %826 = vst.msk [vmem:[%s2386_s3 + $0x78] sm:$0xff] %vm810_vm5, %v809_v57 }
 0x262   : > { %1033 = vst.msk [vmem:[%s2386_s3 + $0x70] sm:$0xff] %vm810_vm5, %v2082_v58 }
 0x263   : > { %1032 = vst.msk [vmem:[%s2386_s3 + $0x68] sm:$0xff] %vm810_vm5, %v2091_v61  ;;  %v935_v63 = vld [vmem:[%s2386_s3 + $0x60] sm:$0xff] }
 0x264   : > { %v2116_v7 = vmul.f32 0.005, %v935_v63  ;;  %907 = vst.msk [vmem:[%s2387_s4] sm:$0xff] %vm810_vm5, %v891_v60 }
 0x265   : > { %v868_v9 = vpop.xlane.xlu2 %867  ;;  %v866_v10 = vpop.xlane.xlu1 %865 }
 0x266   : > { %1031 = vst.msk [vmem:[%s2386_s3 + $0x60] sm:$0xff] %vm810_vm5, %v2116_v7  ;;  %v895_v11 = vadd.f32 %v868_v9, %v831_v1  ;;  %v864_v12 = vpop.xlane.xlu0 %863  ;;  %v894_v13 = vadd.f32 %v866_v10, %v830_v3  ;;  %v994_v3 = vmul.f32 %v1989_v25, %v1989_v25  ;;  %v992_v10 = vmul.f32 %v1929_v16, %v1929_v16 }
 0x267   : > { %v956_v14 = vld [vmem:[%s2387_s4 + $0x8] sm:$0xff]  ;;  %v893_v15 = vadd.f32 %v864_v12, %v829_v8 }
 0x268   : > { %v972_v18 = vmul.f32 0.005, %v956_v14  ;;  %v938_v21 = vld [vmem:[%s2386_s3 + $0x78] sm:$0xff]  ;;  %911 = vst.msk [vmem:[%s2387_s4 + $0x20] sm:$0xff] %vm810_vm5, %v895_v11 }
 0x269   : > { %v2142_v54 = vmul.f32 0.005, %v938_v21  ;;  %909 = vst.msk [vmem:[%s2387_s4 + $0x10] sm:$0xff] %vm810_vm5, %v893_v15  ;;  %v840_v15 = vld [vmem:[%s2387_s4 + $0x68] sm:$0xff] }
 0x26a   : > { %v1004_v53 = vsub.f32 %v972_v18, %v988_v17  ;;  %910 = vst.msk [vmem:[%s2387_s4 + $0x18] sm:$0xff] %vm810_vm5, %v894_v13  ;;  %v993_v13 = vmul.f32 %v2014_v29, %v2014_v29  ;;  %v838_v18 = vld [vmem:[%s2387_s4 + $0x58] sm:$0xff]  ;;  %v839_v29 = vld [vmem:[%s2387_s4 + $0x60] sm:$0xff] }
 0x26b   : > { %1034 = vst.msk [vmem:[%s2386_s3 + $0x78] sm:$0xff] %vm810_vm5, %v2142_v54  ;;  %v955_v22 = vld [vmem:[%s2387_s4] sm:$0xff] }
 0x26c   : > { %v1036_v44 = vmax.f32 %v1004_v53, 0.0  ;;  %v971_v2 = vmul.f32 0.005, %v955_v22 }
 0x26d   : > { %v874_v52 = vpop.xlane.xlu2 %873  ;;  %v872_v20 = vpop.xlane.xlu1 %871 }
 0x26e   : > { %1052 = vst.msk [vmem:[%s2387_s4 + $0x8] sm:$0xff] %vm810_vm5, %v1036_v44  ;;  %v1003_v23 = vsub.f32 %v971_v2, %v987_v5  ;;  %v898_v43 = vadd.f32 %v874_v52, %v834_v6  ;;  %v870_v4 = vpop.xlane.xlu0 %869  ;;  %v897_v28 = vadd.f32 %v872_v20, %v833_v45  ;;  %v997_v20 = vmul.f32 %v2040_v38, %v2040_v38 }
 0x26f   : > { %v959_v27 = vld [vmem:[%s2387_s4 + $0x20] sm:$0xff]  ;;  %v896_v26 = vadd.f32 %v870_v4, %v832_v24  ;;  %v995_v4 = vmul.f32 %v1980_v40, %v1980_v40  ;;  %v996_v38 = vmul.f32 %v2062_v42, %v2062_v42 }
 0x270   : > { %v1035_v31 = vmax.f32 %v1003_v23, 0.0  ;;  %v975_v55 = vmul.f32 0.005, %v959_v27  ;;  %v957_v32 = vld [vmem:[%s2387_s4 + $0x10] sm:$0xff]  ;;  %914 = vst.msk [vmem:[%s2387_s4 + $0x38] sm:$0xff] %vm810_vm5, %v898_v43 }
 0x271   : > { %v973_v34 = vmul.f32 0.005, %v957_v32  ;;  %v958_v36 = vld [vmem:[%s2387_s4 + $0x18] sm:$0xff]  ;;  %912 = vst.msk [vmem:[%s2387_s4 + $0x28] sm:$0xff] %vm810_vm5, %v896_v26 }
 0x272   : > { %1051 = vst.msk [vmem:[%s2387_s4] sm:$0xff] %vm810_vm5, %v1035_v31  ;;  %v1007_v37 = vsub.f32 %v975_v55, %v991_v30  ;;  %v974_v0 = vmul.f32 0.005, %v958_v36  ;;  %v841_v31 = vld [vmem:[%s2387_s4 + $0x70] sm:$0xff]  ;;  %v842_v55 = vld [vmem:[%s2387_s4 + $0x78] sm:$0xff] }
 0x273   : > { %v1005_v39 = vsub.f32 %v973_v34, %v989_v33  ;;  %913 = vst.msk [vmem:[%s2387_s4 + $0x30] sm:$0xff] %vm810_vm5, %v897_v28 }
 0x274   : > { %v1039_v46 = vmax.f32 %v1007_v37, 0.0  ;;  %v1006_v47 = vsub.f32 %v974_v0, %v990_v62 }
 0x275   : > { %v1037_v50 = vmax.f32 %v1005_v39, 0.0  ;;  %v880_v48 = vpop.xlane.xlu2 %879  ;;  %v878_v51 = vpop.xlane.xlu1 %877 }
 0x276   : > { %1055 = vst.msk [vmem:[%s2387_s4 + $0x20] sm:$0xff] %vm810_vm5, %v1039_v46  ;;  %v1038_v56 = vmax.f32 %v1006_v47, 0.0  ;;  %v901_v57 = vadd.f32 %v880_v48, %v837_v41  ;;  %v876_v59 = vpop.xlane.xlu0 %875  ;;  %v900_v1 = vadd.f32 %v878_v51, %v836_v49  ;;  %v1000_v41 = vmul.f32 %v2091_v61, %v2091_v61 }
 0x277   : > { %1053 = vst.msk [vmem:[%s2387_s4 + $0x10] sm:$0xff] %vm810_vm5, %v1037_v50  ;;  %v962_v60 = vld [vmem:[%s2387_s4 + $0x38] sm:$0xff]  ;;  %v899_v63 = vadd.f32 %v876_v59, %v835_v19  ;;  %v998_v19 = vmul.f32 %v2031_v35, %v2031_v35  ;;  %v999_v48 = vmul.f32 %v2116_v7, %v2116_v7 }
 0x278   : > { %1054 = vst.msk [vmem:[%s2387_s4 + $0x18] sm:$0xff] %vm810_vm5, %v1038_v56  ;;  %v978_v8 = vmul.f32 0.005, %v962_v60  ;;  %v960_v9 = vld [vmem:[%s2387_s4 + $0x28] sm:$0xff] }
 0x279   : > { %v976_v11 = vmul.f32 0.005, %v960_v9  ;;  %917 = vst.msk [vmem:[%s2387_s4 + $0x50] sm:$0xff] %vm810_vm5, %v901_v57 }
 0x27a   : > { %v1010_v25 = vsub.f32 %v978_v8, %v994_v3  ;;  %v961_v12 = vld [vmem:[%s2387_s4 + $0x30] sm:$0xff]  ;;  %915 = vst.msk [vmem:[%s2387_s4 + $0x40] sm:$0xff] %vm810_vm5, %v899_v63  ;;  %v1001_v63 = vmul.f32 %v2082_v58, %v2082_v58  ;;  %v1002_v8 = vmul.f32 %v2142_v54, %v2142_v54 }
 0x27b   : > { %v1008_v16 = vsub.f32 %v976_v11, %v992_v10  ;;  %v977_v14 = vmul.f32 0.005, %v961_v12  ;;  %916 = vst.msk [vmem:[%s2387_s4 + $0x48] sm:$0xff] %vm810_vm5, %v900_v1 }
 0x27c   : > { %v1042_v17 = vmax.f32 %v1010_v25, 0.0 }
 0x27d   : > { %v1040_v21 = vmax.f32 %v1008_v16, 0.0  ;;  %v1009_v53 = vsub.f32 %v977_v14, %v993_v13  ;;  %v886_v22 = vpop.xlane.xlu2 %885  ;;  %v884_v6 = vpop.xlane.xlu1 %883 }
 0x27e   : > { %1058 = vst.msk [vmem:[%s2387_s4 + $0x38] sm:$0xff] %vm810_vm5, %v1042_v17  ;;  %v904_v5 = vadd.f32 %v886_v22, %v840_v15  ;;  %v882_v44 = vpop.xlane.xlu0 %881  ;;  %v903_v45 = vadd.f32 %v884_v6, %v839_v29 }
 0x27f   : > { %1056 = vst.msk [vmem:[%s2387_s4 + $0x28] sm:$0xff] %vm810_vm5, %v1040_v21  ;;  %v1041_v2 = vmax.f32 %v1009_v53, 0.0  ;;  %v902_v24 = vadd.f32 %v882_v44, %v838_v18 }
 0x280   : > { %v965_v52 = vld [vmem:[%s2387_s4 + $0x50] sm:$0xff]  ;;  %920 = vst.msk [vmem:[%s2387_s4 + $0x68] sm:$0xff] %vm810_vm5, %v904_v5 }
 0x281   : > { %1057 = vst.msk [vmem:[%s2387_s4 + $0x30] sm:$0xff] %vm810_vm5, %v1041_v2  ;;  %v981_v23 = vmul.f32 0.005, %v965_v52  ;;  %v963_v43 = vld [vmem:[%s2387_s4 + $0x40] sm:$0xff] }
 0x282   : > { %v979_v27 = vmul.f32 0.005, %v963_v43  ;;  %v964_v26 = vld [vmem:[%s2387_s4 + $0x48] sm:$0xff]  ;;  %918 = vst.msk [vmem:[%s2387_s4 + $0x58] sm:$0xff] %vm810_vm5, %v902_v24 }
 0x283   : > { %v1013_v28 = vsub.f32 %v981_v23, %v997_v20  ;;  %v980_v30 = vmul.f32 0.005, %v964_v26  ;;  %919 = vst.msk [vmem:[%s2387_s4 + $0x60] sm:$0xff] %vm810_vm5, %v903_v45 }
 0x284   : > { %v1011_v40 = vsub.f32 %v979_v27, %v995_v4 }
 0x285   : > { %v1045_v32 = vmax.f32 %v1013_v28, 0.0  ;;  %v1012_v33 = vsub.f32 %v980_v30, %v996_v38  ;;  %v890_v34 = vpop.xlane.xlu1 %889 }
 0x286   : > { %v1043_v42 = vmax.f32 %v1011_v40, 0.0  ;;  %v888_v36 = vpop.xlane.xlu0 %887  ;;  %v906_v39 = vadd.f32 %v890_v34, %v842_v55 }
 0x287   : > { %1061 = vst.msk [vmem:[%s2387_s4 + $0x50] sm:$0xff] %vm810_vm5, %v1045_v32  ;;  %v1044_v62 = vmax.f32 %v1012_v33, 0.0  ;;  %v968_v37 = vld [vmem:[%s2387_s4 + $0x68] sm:$0xff]  ;;  %v905_v0 = vadd.f32 %v888_v36, %v841_v31 }
 0x288   : > { %1059 = vst.msk [vmem:[%s2387_s4 + $0x40] sm:$0xff] %vm810_vm5, %v1043_v42  ;;  %v984_v46 = vmul.f32 0.005, %v968_v37 }
 0x289   : > { %1060 = vst.msk [vmem:[%s2387_s4 + $0x48] sm:$0xff] %vm810_vm5, %v1044_v62  ;;  %v966_v47 = vld [vmem:[%s2387_s4 + $0x58] sm:$0xff] }
 0x28a   : > { %v1016_v49 = vsub.f32 %v984_v46, %v1000_v41  ;;  %v982_v61 = vmul.f32 0.005, %v966_v47  ;;  %v967_v50 = vld [vmem:[%s2387_s4 + $0x60] sm:$0xff]  ;;  %921 = vst.msk [vmem:[%s2387_s4 + $0x70] sm:$0xff] %vm810_vm5, %v905_v0 }
 0x28b   : > { %v983_v51 = vmul.f32 0.005, %v967_v50  ;;  %922 = vst.msk [vmem:[%s2387_s4 + $0x78] sm:$0xff] %vm810_vm5, %v906_v39 }
 0x28c   : > { %v1048_v35 = vmax.f32 %v1016_v49, 0.0  ;;  %v1014_v56 = vsub.f32 %v982_v61, %v998_v19 }
 0x28d   : > { %v1015_v57 = vsub.f32 %v983_v51, %v999_v48 }
 0x28e   : > { %1064 = vst.msk [vmem:[%s2387_s4 + $0x68] sm:$0xff] %vm810_vm5, %v1048_v35  ;;  %v1046_v59 = vmax.f32 %v1014_v56, 0.0 }
 0x28f   : > { %v1047_v60 = vmax.f32 %v1015_v57, 0.0 }
 0x290   : > { %1062 = vst.msk [vmem:[%s2387_s4 + $0x58] sm:$0xff] %vm810_vm5, %v1046_v59 }
 0x291   : > { %1063 = vst.msk [vmem:[%s2387_s4 + $0x60] sm:$0xff] %vm810_vm5, %v1047_v60  ;;  %v969_v7 = vld [vmem:[%s2387_s4 + $0x70] sm:$0xff] }
 0x292   : > { %v985_v1 = vmul.f32 0.005, %v969_v7  ;;  %v970_v3 = vld [vmem:[%s2387_s4 + $0x78] sm:$0xff] }
 0x293   : > { %v986_v9 = vmul.f32 0.005, %v970_v3 }
 0x294   : > { %v1017_v10 = vsub.f32 %v985_v1, %v1001_v63 }
 0x295   : > { %v1018_v11 = vsub.f32 %v986_v9, %v1002_v8 }
 0x296   : > { %v1049_v25 = vmax.f32 %v1017_v10, 0.0 }
 0x297   : > { %v1050_v12 = vmax.f32 %v1018_v11, 0.0 }
 0x298   : > { %1065 = vst.msk [vmem:[%s2387_s4 + $0x70] sm:$0xff] %vm810_vm5, %v1049_v25 }
 0x299   : > { %1066 = vst.msk [vmem:[%s2387_s4 + $0x78] sm:$0xff] %vm810_vm5, %v1050_v12 }
 0x29a PF: > { %p12_p11 = scmp.ge.s32.totalorder %s1238_s19, 4   ;;  %s2388_s15 = smov %s1190_s16 }
 0x29b   : > { %s2389_s16 = smov %s1245_s22  ;;  %s2390_s17 = smov %s1238_s19 }
 0x29c   :  { %14 = sbr.rel (!%p12_p11) target bundleno = 2 (0x2), region = 121 }

</bundles_post_ra>
